<compile_context>
chip_gen: v6e
topology: v6e:2x2x1
jax: 0.10.0
libtpu: 0.0.40
codegen_flags: <defaults>
</compile_context>

<pallas_src>
import jax
import jax.numpy as jnp
from jax import lax
from jax.experimental import pallas as pl
from jax.experimental.pallas import tpu as pltpu

EPS = 1e-5
_HI = jax.lax.Precision.HIGHEST
LANE = 128
VMEM_LIMIT = 48 * 1024 * 1024  # below v7x 64 MiB physical, above v5e/v6e defaults


# ------------------------------ small helpers -------------------------------

def _round_up(x, m):
    return (x + m - 1) // m * m


def _choose_tm(m):
    # ~512 rows per tile when the layer is big enough; otherwise one tile.
    return 512 if m >= 512 else _round_up(m, 16)


def _pad_rows(a, rows):
    return jnp.pad(a, ((0, rows - a.shape[0]), (0, 0)))


def _pad_cols(a, cols):
    return jnp.pad(a, ((0, 0), (0, cols - a.shape[1])))


# ------------------------------ Pallas kernels ------------------------------

def conv_stats_kernel(p_ref, w_ref, y_ref, s_ref, q_ref):
    """y = p @ w (bf16 x bf16, f32 accum on MXU); accumulate per-channel
    sum / sum-of-squares into resident (1, Cp) accumulators."""
    @pl.when(pl.program_id(0) == 0)
    def _():
        s_ref[...] = jnp.zeros_like(s_ref)
        q_ref[...] = jnp.zeros_like(q_ref)

    y = jnp.dot(p_ref[...], w_ref[...], preferred_element_type=jnp.float32)
    y_ref[...] = y
    s_ref[...] += jnp.sum(y, axis=0, keepdims=True)
    q_ref[...] += jnp.sum(y * y, axis=0, keepdims=True)


def conv_proj_stats_kernel(p_ref, w_ref, sp_ref, sw_ref,
                           y_ref, ys_ref, s_ref, q_ref, ss_ref, qs_ref):
    """conv2 matmul fused with the 1x1 projection-shortcut matmul, both with
    BN partial sums, in one M-tiled pass."""
    @pl.when(pl.program_id(0) == 0)
    def _():
        s_ref[...] = jnp.zeros_like(s_ref)
        q_ref[...] = jnp.zeros_like(q_ref)
        ss_ref[...] = jnp.zeros_like(ss_ref)
        qs_ref[...] = jnp.zeros_like(qs_ref)

    y = jnp.dot(p_ref[...], w_ref[...], preferred_element_type=jnp.float32)
    ys = jnp.dot(sp_ref[...], sw_ref[...], preferred_element_type=jnp.float32)
    y_ref[...] = y
    ys_ref[...] = ys
    s_ref[...] += jnp.sum(y, axis=0, keepdims=True)
    q_ref[...] += jnp.sum(y * y, axis=0, keepdims=True)
    ss_ref[...] += jnp.sum(ys, axis=0, keepdims=True)
    qs_ref[...] += jnp.sum(ys * ys, axis=0, keepdims=True)


def bn_relu_kernel(y_ref, sc_ref, sh_ref, o_ref):
    """out1 = relu(y * scale + shift), emitted in bf16 for the next conv."""
    o_ref[...] = jnp.maximum(
        y_ref[...] * sc_ref[...] + sh_ref[...], 0.0).astype(o_ref.dtype)


def bn_add_relu_id_kernel(y_ref, x_ref, sc_ref, sh_ref, o_ref):
    """out = relu(bn2(y) + x) — identity shortcut."""
    o_ref[...] = jnp.maximum(
        y_ref[...] * sc_ref[...] + sh_ref[...] + x_ref[...], 0.0)


def bn_add_relu_proj_kernel(y_ref, ys_ref, sc_ref, sh_ref, scs_ref, shs_ref,
                            o_ref):
    """out = relu(bn2(y) + bn_s(y_shortcut)) — projection shortcut."""
    out = (y_ref[...] * sc_ref[...] + sh_ref[...]
           + ys_ref[...] * scs_ref[...] + shs_ref[...])
    o_ref[...] = jnp.maximum(out, 0.0)


# --------------------------- tiled pallas_call glue --------------------------

def _row_tiled_call(kernel, inputs, in_tiled, out_shapes, out_tiled,
                    mp, tm, reduction):
    """Grid over the padded row axis (mp // tm steps).  'tiled' operands get a
    (tm, C) block sliding over rows; others are resident (constant index_map),
    which for outputs gives the BN-stats accumulator pattern."""
    def spec(shape, tiled):
        if tiled:
            return pl.BlockSpec((tm, shape[1]), lambda i: (i, 0))
        return pl.BlockSpec(shape, lambda i: (0,) * len(shape))

    grid = (mp // tm,)
    return pl.pallas_call(
        kernel,
        out_shape=tuple(out_shapes),
        grid_spec=pltpu.PrefetchScalarGridSpec(
            num_scalar_prefetch=0,
            grid=grid,
            in_specs=[spec(a.shape, t) for a, t in zip(inputs, in_tiled)],
            out_specs=[spec(s.shape, t) for s, t in zip(out_shapes, out_tiled)],
        ),
        compiler_params=pltpu.CompilerParams(
            # Stats accumulators carry across the M axis -> "arbitrary";
            # pure elementwise epilogues are "parallel" (v7x 2nd TensorCore).
            dimension_semantics=("arbitrary",) if reduction else ("parallel",),
            vmem_limit_bytes=VMEM_LIMIT),
    )(*inputs)


def _im2col(x, k, stride, pad):
    """x: (N,H,W,C) -> patches (N*Ho*Wo, k*k*C), tap-major / channel-minor."""
    n, h, w, c = x.shape
    xp = jnp.pad(x, ((0, 0), (pad, pad), (pad, pad), (0, 0)))
    ho = (h + 2 * pad - k) // stride + 1
    wo = (w + 2 * pad - k) // stride + 1
    cols = []
    for di in range(k):
        for dj in range(k):
            patch = lax.slice(
                xp,
                (0, di, dj, 0),
                (n, di + (ho - 1) * stride + 1, dj + (wo - 1) * stride + 1, c),
                (1, stride, stride, 1))
            cols.append(patch.reshape(n * ho * wo, c))
    return jnp.concatenate(cols, axis=-1), ho, wo


def _bn_finalize(s, q, m, gamma, beta, cp):
    """Per-channel scale/shift from accumulated sum / sum-of-squares (f32,
    training-mode biased variance). Tiny O(C) op — plain JAX."""
    mean = s / m
    var = jnp.maximum(q / m - mean * mean, 0.0)
    g = _pad_cols(gamma.reshape(1, -1).astype(jnp.float32), cp)
    b = _pad_cols(beta.reshape(1, -1).astype(jnp.float32), cp)
    scale = g * lax.rsqrt(var + EPS)
    shift = b - mean * scale
    return scale, shift


# -------------------------------- forward -----------------------------------

def basic_block_forward(x_nhwc, params, stride):
    """ResNet BasicBlock forward (training-mode BN), NHWC in / NHWC out."""
    n, h, w, cin = x_nhwc.shape
    cout = params["w1"].shape[-1]
    cp = _round_up(cout, LANE)
    projection = (stride != 1) or (cin != cout)

    # -------- conv1 (3x3, stride) + BN1 partial sums --------
    p1, ho, wo = _im2col(x_nhwc, 3, stride, 1)                 # (M, 9*Cin) f32
    m = n * ho * wo
    tm = _choose_tm(m)
    mp = _round_up(m, tm)
    p1 = _pad_rows(p1, mp).astype(jnp.bfloat16)
    w1f = _pad_cols(params["w1"].reshape(9 * cin, cout), cp).astype(jnp.bfloat16)

    y1, s1, q1 = _row_tiled_call(
        conv_stats_kernel,
        inputs=[p1, w1f], in_tiled=[True, False],
        out_shapes=[jax.ShapeDtypeStruct((mp, cp), jnp.float32),
                    jax.ShapeDtypeStruct((1, cp), jnp.float32),
                    jax.ShapeDtypeStruct((1, cp), jnp.float32)],
        out_tiled=[True, False, False],
        mp=mp, tm=tm, reduction=True)
    sc1, sh1 = _bn_finalize(s1, q1, m, params["g1"], params["b1"], cp)

    # -------- BN1 apply + ReLU (tiled epilogue, bf16 activations) --------
    (a1,) = _row_tiled_call(
        bn_relu_kernel,
        inputs=[y1, sc1, sh1], in_tiled=[True, False, False],
        out_shapes=[jax.ShapeDtypeStruct((mp, cp), jnp.bfloat16)],
        out_tiled=[True],
        mp=mp, tm=tm, reduction=False)

    # -------- conv2 (3x3, s=1) (+ fused 1x1 shortcut) + BN partial sums ------
    a1_img = a1[:m].reshape(n, ho, wo, cp)[..., :cout]
    p2, _, _ = _im2col(a1_img, 3, 1, 1)                        # (M, 9*Cout) bf16
    p2 = _pad_rows(p2, mp)
    w2f = _pad_cols(params["w2"].reshape(9 * cout, cout), cp).astype(jnp.bfloat16)

    if projection:
        xs = x_nhwc[:, ::stride, ::stride, :].reshape(m, cin)  # 1x1-conv input
        xs = _pad_rows(xs, mp).astype(jnp.bfloat16)
        wsf = _pad_cols(params["ws"].reshape(cin, cout), cp).astype(jnp.bfloat16)
        y2, ys, s2, q2, ss, qs = _row_tiled_call(
            conv_proj_stats_kernel,
            inputs=[p2, w2f, xs, wsf], in_tiled=[True, False, True, False],
            out_shapes=[jax.ShapeDtypeStruct((mp, cp), jnp.float32),
                        jax.ShapeDtypeStruct((mp, cp), jnp.float32),
                        jax.ShapeDtypeStruct((1, cp), jnp.float32),
                        jax.ShapeDtypeStruct((1, cp), jnp.float32),
                        jax.ShapeDtypeStruct((1, cp), jnp.float32),
                        jax.ShapeDtypeStruct((1, cp), jnp.float32)],
            out_tiled=[True, True, False, False, False, False],
            mp=mp, tm=tm, reduction=True)
        sc2, sh2 = _bn_finalize(s2, q2, m, params["g2"], params["b2"], cp)
        scs, shs = _bn_finalize(ss, qs, m, params["gs"], params["bs"], cp)
        (out,) = _row_tiled_call(
            bn_add_relu_proj_kernel,
            inputs=[y2, ys, sc2, sh2, scs, shs],
            in_tiled=[True, True, False, False, False, False],
            out_shapes=[jax.ShapeDtypeStruct((mp, cp), jnp.float32)],
            out_tiled=[True],
            mp=mp, tm=tm, reduction=False)
    else:
        y2, s2, q2 = _row_tiled_call(
            conv_stats_kernel,
            inputs=[p2, w2f], in_tiled=[True, False],
            out_shapes=[jax.ShapeDtypeStruct((mp, cp), jnp.float32),
                        jax.ShapeDtypeStruct((1, cp), jnp.float32),
                        jax.ShapeDtypeStruct((1, cp), jnp.float32)],
            out_tiled=[True, False, False],
            mp=mp, tm=tm, reduction=True)
        sc2, sh2 = _bn_finalize(s2, q2, m, params["g2"], params["b2"], cp)
        x_id = _pad_rows(_pad_cols(x_nhwc.reshape(m, cin), cp), mp)   # f32
        (out,) = _row_tiled_call(
            bn_add_relu_id_kernel,
            inputs=[y2, x_id, sc2, sh2],
            in_tiled=[True, True, False, False],
            out_shapes=[jax.ShapeDtypeStruct((mp, cp), jnp.float32)],
            out_tiled=[True],
            mp=mp, tm=tm, reduction=False)

    return out[:m, :cout].reshape(n, ho, wo, cout)


# --------------------------- pure-JAX reference ------------------------------

def _ref_block(x_nhwc, params, stride):
    def conv(inp, wgt, s, pad):
        return lax.conv_general_dilated(
            inp, wgt, (s, s), ((pad, pad), (pad, pad)),
            dimension_numbers=("NHWC", "HWIO", "NHWC"), precision=_HI)

    def bn(y, g, b):
        mean = jnp.mean(y, axis=(0, 1, 2), keepdims=True)
        var = jnp.mean(jnp.square(y - mean), axis=(0, 1, 2), keepdims=True)
        return ((y - mean) * lax.rsqrt(var + EPS)
                * g.reshape(1, 1, 1, -1) + b.reshape(1, 1, 1, -1))

    cin = x_nhwc.shape[-1]
    cout = params["w1"].shape[-1]
    out = jax.nn.relu(bn(conv(x_nhwc, params["w1"], stride, 1),
                         params["g1"], params["b1"]))
    out = bn(conv(out, params["w2"], 1, 1), params["g2"], params["b2"])
    if stride != 1 or cin != cout:
        sc = bn(conv(x_nhwc, params["ws"], stride, 0),
                params["gs"], params["bs"])
    else:
        sc = x_nhwc
    return jax.nn.relu(out + sc)


# ------------------------------ params / main --------------------------------

def init_params(key, cin, cout, stride):
    ks = jax.random.split(key, 9)
    p = dict(
        w1=jax.random.normal(ks[0], (3, 3, cin, cout), jnp.float32)
           / jnp.sqrt(9.0 * cin),
        g1=1.0 + 0.1 * jax.random.normal(ks[1], (cout,), jnp.float32),
        b1=0.1 * jax.random.normal(ks[2], (cout,), jnp.float32),
        w2=jax.random.normal(ks[3], (3, 3, cout, cout), jnp.float32)
           / jnp.sqrt(9.0 * cout),
        g2=1.0 + 0.1 * jax.random.normal(ks[4], (cout,), jnp.float32),
        b2=0.1 * jax.random.normal(ks[5], (cout,), jnp.float32),
    )
    if stride != 1 or cin != cout:
        p.update(
            ws=jax.random.normal(ks[6], (1, 1, cin, cout), jnp.float32)
               / jnp.sqrt(1.0 * cin),
            gs=1.0 + 0.1 * jax.random.normal(ks[7], (cout,), jnp.float32),
            bs=0.1 * jax.random.normal(ks[8], (cout,), jnp.float32),
        )
    return p


if __name__ == "__main__":
    key = jax.random.PRNGKey(0)
    k_x1, k_p1, k_x2, k_p2 = jax.random.split(key, 4)

    fwd = jax.jit(basic_block_forward, static_argnums=2)

    # bf16 MXU inputs (f32 accumulation) -> compare at a bf16-appropriate tol.
    TOL = 5e-2

    # Case 1: projection shortcut (stride=2, 4 -> 8 channels); x is NCHW like torch
    N, Cin, H, W, Cout, stride = 2, 4, 16, 16, 8, 2
    x_nchw = jax.random.normal(k_x1, (N, Cin, H, W), jnp.float32)
    x_nhwc = jnp.transpose(x_nchw, (0, 2, 3, 1))        # NCHW -> NHWC (glue)
    params = init_params(k_p1, Cin, Cout, stride)
    out = fwd(x_nhwc, params, stride)
    jax.block_until_ready(out)
    ref = _ref_block(x_nhwc, params, stride)
    assert out.shape == (N, H // stride, W // stride, Cout)
    err = float(jnp.max(jnp.abs(out - ref)))
    assert jnp.allclose(out, ref, atol=TOL, rtol=TOL), f"projection mismatch {err}"

    # Case 2: identity shortcut (stride=1, channels equal)
    N2, C2, H2 = 2, 8, 8
    x2 = jnp.transpose(jax.random.normal(k_x2, (N2, C2, H2, H2), jnp.float32),
                       (0, 2, 3, 1))
    params2 = init_params(k_p2, C2, C2, 1)
    out2 = fwd(x2, params2, 1)
    jax.block_until_ready(out2)
    ref2 = _ref_block(x2, params2, 1)
    err2 = float(jnp.max(jnp.abs(out2 - ref2)))
    assert out2.shape == (N2, H2, H2, C2)
    assert jnp.allclose(out2, ref2, atol=TOL, rtol=TOL), f"identity mismatch {err2}"

    print("KERNEL_OK")
</pallas_src>

<mosaic_0001>
module attributes {stable_mosaic.version = 11 : i64} {
  func.func @conv_stats_kernel(%arg0: i32, %arg1: memref<128x36xbf16, #tpu.memory_space<vmem>>, %arg2: memref<36x128xbf16, #tpu.memory_space<vmem>>, %arg3: memref<128x128xf32, #tpu.memory_space<vmem>>, %arg4: memref<1x128xf32, #tpu.memory_space<vmem>>, %arg5: memref<1x128xf32, #tpu.memory_space<vmem>>) attributes {dimension_semantics = [#tpu.dimension_semantics<arbitrary>], iteration_bounds = array<i64: 1>, scalar_prefetch = 0 : i64, scratch_operands = 0 : i64, tpu.core_type = #tpu.core_type<tc>, window_params = [{transform_indices = @transform_0, window_bounds = array<i64: 128, 36>}, {pipeline_mode = #tpu.pipeline_mode<synchronous>, transform_indices = @transform_1, window_bounds = array<i64: 36, 128>}, {transform_indices = @transform_2, window_bounds = array<i64: 128, 128>}, {pipeline_mode = #tpu.pipeline_mode<synchronous>, transform_indices = @transform_3, window_bounds = array<i64: 1, 128>}, {pipeline_mode = #tpu.pipeline_mode<synchronous>, transform_indices = @transform_4, window_bounds = array<i64: 1, 128>}]} {
    %c0_i32 = arith.constant 0 : i32
    %0 = arith.cmpi eq, %arg0, %c0_i32 : i32
    %1 = arith.extui %0 : i1 to i32
    %c0_i32_0 = arith.constant 0 : i32
    %2 = arith.cmpi ne, %1, %c0_i32_0 : i32
    scf.if %2 {
      %cst_16 = arith.constant 0.000000e+00 : f32
      %18 = vector.broadcast %cst_16 : f32 to vector<1x128xf32>
      %c0_17 = arith.constant 0 : index
      %c0_18 = arith.constant 0 : index
      %19 = vector.load %arg4[%c0_17, %c0_18] : memref<1x128xf32, #tpu.memory_space<vmem>>, vector<1x128xf32>
      tpu.vector_store %arg4[%c0_17, %c0_18], %18 {strides = array<i32>} : memref<1x128xf32, #tpu.memory_space<vmem>>, vector<1x128xf32>,
      %cst_19 = arith.constant 0.000000e+00 : f32
      %20 = vector.broadcast %cst_19 : f32 to vector<1x128xf32>
      %c0_20 = arith.constant 0 : index
      %c0_21 = arith.constant 0 : index
      %21 = vector.load %arg5[%c0_20, %c0_21] : memref<1x128xf32, #tpu.memory_space<vmem>>, vector<1x128xf32>
      tpu.vector_store %arg5[%c0_20, %c0_21], %20 {strides = array<i32>} : memref<1x128xf32, #tpu.memory_space<vmem>>, vector<1x128xf32>,
    } else {
    }
    %c0 = arith.constant 0 : index
    %c0_1 = arith.constant 0 : index
    %3 = vector.load %arg1[%c0, %c0_1] : memref<128x36xbf16, #tpu.memory_space<vmem>>, vector<128x36xbf16>
    %c0_2 = arith.constant 0 : index
    %c0_3 = arith.constant 0 : index
    %4 = vector.load %arg2[%c0_2, %c0_3] : memref<36x128xbf16, #tpu.memory_space<vmem>>, vector<36x128xbf16>
    %cst = arith.constant dense<0.000000e+00> : vector<128x128xf32>
    %5 = tpu.matmul %3, %4, %cst {dimension_numbers = #tpu.dot_dimension_numbers<[1], [0], [0], [1], [0, 0, 1, 1], [], []>} : vector<128x36xbf16>, vector<36x128xbf16>, vector<128x128xf32> -> vector<128x128xf32>
    %c0_4 = arith.constant 0 : index
    %c0_5 = arith.constant 0 : index
    %6 = vector.load %arg3[%c0_4, %c0_5] : memref<128x128xf32, #tpu.memory_space<vmem>>, vector<128x128xf32>
    tpu.vector_store %arg3[%c0_4, %c0_5], %5 {strides = array<i32>} : memref<128x128xf32, #tpu.memory_space<vmem>>, vector<128x128xf32>,
    %c0_6 = arith.constant 0 : index
    %c0_7 = arith.constant 0 : index
    %7 = vector.load %arg4[%c0_6, %c0_7] : memref<1x128xf32, #tpu.memory_space<vmem>>, vector<1x128xf32>
    %cst_8 = arith.constant dense<0.000000e+00> : vector<128xf32>
    %8 = vector.multi_reduction <add>, %5, %cst_8 [0] : vector<128x128xf32> to vector<128xf32>
    %9 = vector.shape_cast %8 : vector<128xf32> to vector<1x128xf32>
    %10 = arith.addf %7, %9 : vector<1x128xf32>
    %c0_9 = arith.constant 0 : index
    %c0_10 = arith.constant 0 : index
    %11 = vector.load %arg4[%c0_9, %c0_10] : memref<1x128xf32, #tpu.memory_space<vmem>>, vector<1x128xf32>
    tpu.vector_store %arg4[%c0_9, %c0_10], %10 {strides = array<i32>} : memref<1x128xf32, #tpu.memory_space<vmem>>, vector<1x128xf32>,
    %c0_11 = arith.constant 0 : index
    %c0_12 = arith.constant 0 : index
    %12 = vector.load %arg5[%c0_11, %c0_12] : memref<1x128xf32, #tpu.memory_space<vmem>>, vector<1x128xf32>
    %13 = arith.mulf %5, %5 : vector<128x128xf32>
    %cst_13 = arith.constant dense<0.000000e+00> : vector<128xf32>
    %14 = vector.multi_reduction <add>, %13, %cst_13 [0] : vector<128x128xf32> to vector<128xf32>
    %15 = vector.shape_cast %14 : vector<128xf32> to vector<1x128xf32>
    %16 = arith.addf %12, %15 : vector<1x128xf32>
    %c0_14 = arith.constant 0 : index
    %c0_15 = arith.constant 0 : index
    %17 = vector.load %arg5[%c0_14, %c0_15] : memref<1x128xf32, #tpu.memory_space<vmem>>, vector<1x128xf32>
    tpu.vector_store %arg5[%c0_14, %c0_15], %16 {strides = array<i32>} : memref<1x128xf32, #tpu.memory_space<vmem>>, vector<1x128xf32>,
    return
  }
  func.func @transform_0(%arg0: i32) -> (i32, i32) {
    %c0_i32 = arith.constant 0 : i32
    %c0_i32_0 = arith.constant 0 : i32
    return %arg0, %c0_i32 : i32, i32
  }
  func.func @transform_1(%arg0: i32) -> (i32, i32) {
    %c0_i32 = arith.constant 0 : i32
    %c0_i32_0 = arith.constant 0 : i32
    %c0_i32_1 = arith.constant 0 : i32
    return %c0_i32, %c0_i32_0 : i32, i32
  }
  func.func @transform_2(%arg0: i32) -> (i32, i32) {
    %c0_i32 = arith.constant 0 : i32
    %c0_i32_0 = arith.constant 0 : i32
    return %arg0, %c0_i32 : i32, i32
  }
  func.func @transform_3(%arg0: i32) -> (i32, i32) {
    %c0_i32 = arith.constant 0 : i32
    %c0_i32_0 = arith.constant 0 : i32
    %c0_i32_1 = arith.constant 0 : i32
    return %c0_i32, %c0_i32_0 : i32, i32
  }
  func.func @transform_4(%arg0: i32) -> (i32, i32) {
    %c0_i32 = arith.constant 0 : i32
    %c0_i32_0 = arith.constant 0 : i32
    %c0_i32_1 = arith.constant 0 : i32
    return %c0_i32, %c0_i32_0 : i32, i32
  }
}

module attributes {stable_mosaic.version = 11 : i64} {
  func.func @bn_relu_kernel(%arg0: i32, %arg1: memref<128x128xf32, #tpu.memory_space<vmem>>, %arg2: memref<1x128xf32, #tpu.memory_space<vmem>>, %arg3: memref<1x128xf32, #tpu.memory_space<vmem>>, %arg4: memref<128x128xbf16, #tpu.memory_space<vmem>>) attributes {dimension_semantics = [#tpu.dimension_semantics<parallel>], iteration_bounds = array<i64: 1>, scalar_prefetch = 0 : i64, scratch_operands = 0 : i64, tpu.core_type = #tpu.core_type<tc>, window_params = [{transform_indices = @transform_0, window_bounds = array<i64: 128, 128>}, {pipeline_mode = #tpu.pipeline_mode<synchronous>, transform_indices = @transform_1, window_bounds = array<i64: 1, 128>}, {pipeline_mode = #tpu.pipeline_mode<synchronous>, transform_indices = @transform_2, window_bounds = array<i64: 1, 128>}, {transform_indices = @transform_3, window_bounds = array<i64: 128, 128>}]} {
    %c0 = arith.constant 0 : index
    %c0_0 = arith.constant 0 : index
    %0 = vector.load %arg1[%c0, %c0_0] : memref<128x128xf32, #tpu.memory_space<vmem>>, vector<128x128xf32>
    %c0_1 = arith.constant 0 : index
    %c0_2 = arith.constant 0 : index
    %1 = vector.load %arg2[%c0_1, %c0_2] : memref<1x128xf32, #tpu.memory_space<vmem>>, vector<1x128xf32>
    %2 = vector.broadcast %1 : vector<1x128xf32> to vector<128x128xf32>
    %3 = arith.mulf %0, %2 : vector<128x128xf32>
    %c0_3 = arith.constant 0 : index
    %c0_4 = arith.constant 0 : index
    %4 = vector.load %arg3[%c0_3, %c0_4] : memref<1x128xf32, #tpu.memory_space<vmem>>, vector<1x128xf32>
    %5 = vector.broadcast %4 : vector<1x128xf32> to vector<128x128xf32>
    %6 = arith.addf %3, %5 : vector<128x128xf32>
    %cst = arith.constant 0.000000e+00 : f32
    %7 = vector.broadcast %cst : f32 to vector<128x128xf32>
    %8 = arith.maximumf %6, %7 : vector<128x128xf32>
    %9 = arith.truncf %8 : vector<128x128xf32> to vector<128x128xbf16>
    %c0_5 = arith.constant 0 : index
    %c0_6 = arith.constant 0 : index
    %10 = vector.load %arg4[%c0_5, %c0_6] : memref<128x128xbf16, #tpu.memory_space<vmem>>, vector<128x128xbf16>
    tpu.vector_store %arg4[%c0_5, %c0_6], %9 {strides = array<i32>} : memref<128x128xbf16, #tpu.memory_space<vmem>>, vector<128x128xbf16>,
    return
  }
  func.func @transform_0(%arg0: i32) -> (i32, i32) {
    %c0_i32 = arith.constant 0 : i32
    %c0_i32_0 = arith.constant 0 : i32
    return %arg0, %c0_i32 : i32, i32
  }
  func.func @transform_1(%arg0: i32) -> (i32, i32) {
    %c0_i32 = arith.constant 0 : i32
    %c0_i32_0 = arith.constant 0 : i32
    %c0_i32_1 = arith.constant 0 : i32
    return %c0_i32, %c0_i32_0 : i32, i32
  }
  func.func @transform_2(%arg0: i32) -> (i32, i32) {
    %c0_i32 = arith.constant 0 : i32
    %c0_i32_0 = arith.constant 0 : i32
    %c0_i32_1 = arith.constant 0 : i32
    return %c0_i32, %c0_i32_0 : i32, i32
  }
  func.func @transform_3(%arg0: i32) -> (i32, i32) {
    %c0_i32 = arith.constant 0 : i32
    %c0_i32_0 = arith.constant 0 : i32
    return %arg0, %c0_i32 : i32, i32
  }
}

module attributes {stable_mosaic.version = 11 : i64} {
  func.func @conv_proj_stats_kernel(%arg0: i32, %arg1: memref<128x72xbf16, #tpu.memory_space<vmem>>, %arg2: memref<72x128xbf16, #tpu.memory_space<vmem>>, %arg3: memref<128x4xbf16, #tpu.memory_space<vmem>>, %arg4: memref<4x128xbf16, #tpu.memory_space<vmem>>, %arg5: memref<128x128xf32, #tpu.memory_space<vmem>>, %arg6: memref<128x128xf32, #tpu.memory_space<vmem>>, %arg7: memref<1x128xf32, #tpu.memory_space<vmem>>, %arg8: memref<1x128xf32, #tpu.memory_space<vmem>>, %arg9: memref<1x128xf32, #tpu.memory_space<vmem>>, %arg10: memref<1x128xf32, #tpu.memory_space<vmem>>) attributes {dimension_semantics = [#tpu.dimension_semantics<arbitrary>], iteration_bounds = array<i64: 1>, scalar_prefetch = 0 : i64, scratch_operands = 0 : i64, tpu.core_type = #tpu.core_type<tc>, window_params = [{transform_indices = @transform_0, window_bounds = array<i64: 128, 72>}, {pipeline_mode = #tpu.pipeline_mode<synchronous>, transform_indices = @transform_1, window_bounds = array<i64: 72, 128>}, {transform_indices = @transform_2, window_bounds = array<i64: 128, 4>}, {pipeline_mode = #tpu.pipeline_mode<synchronous>, transform_indices = @transform_3, window_bounds = array<i64: 4, 128>}, {transform_indices = @transform_4, window_bounds = array<i64: 128, 128>}, {transform_indices = @transform_5, window_bounds = array<i64: 128, 128>}, {pipeline_mode = #tpu.pipeline_mode<synchronous>, transform_indices = @transform_6, window_bounds = array<i64: 1, 128>}, {pipeline_mode = #tpu.pipeline_mode<synchronous>, transform_indices = @transform_7, window_bounds = array<i64: 1, 128>}, {pipeline_mode = #tpu.pipeline_mode<synchronous>, transform_indices = @transform_8, window_bounds = array<i64: 1, 128>}, {pipeline_mode = #tpu.pipeline_mode<synchronous>, transform_indices = @transform_9, window_bounds = array<i64: 1, 128>}]} {
    %c0_i32 = arith.constant 0 : i32
    %0 = arith.cmpi eq, %arg0, %c0_i32 : i32
    %1 = arith.extui %0 : i1 to i32
    %c0_i32_0 = arith.constant 0 : i32
    %2 = arith.cmpi ne, %1, %c0_i32_0 : i32
    scf.if %2 {
      %cst_33 = arith.constant 0.000000e+00 : f32
      %33 = vector.broadcast %cst_33 : f32 to vector<1x128xf32>
      %c0_34 = arith.constant 0 : index
      %c0_35 = arith.constant 0 : index
      %34 = vector.load %arg7[%c0_34, %c0_35] : memref<1x128xf32, #tpu.memory_space<vmem>>, vector<1x128xf32>
      tpu.vector_store %arg7[%c0_34, %c0_35], %33 {strides = array<i32>} : memref<1x128xf32, #tpu.memory_space<vmem>>, vector<1x128xf32>,
      %cst_36 = arith.constant 0.000000e+00 : f32
      %35 = vector.broadcast %cst_36 : f32 to vector<1x128xf32>
      %c0_37 = arith.constant 0 : index
      %c0_38 = arith.constant 0 : index
      %36 = vector.load %arg8[%c0_37, %c0_38] : memref<1x128xf32, #tpu.memory_space<vmem>>, vector<1x128xf32>
      tpu.vector_store %arg8[%c0_37, %c0_38], %35 {strides = array<i32>} : memref<1x128xf32, #tpu.memory_space<vmem>>, vector<1x128xf32>,
      %cst_39 = arith.constant 0.000000e+00 : f32
      %37 = vector.broadcast %cst_39 : f32 to vector<1x128xf32>
      %c0_40 = arith.constant 0 : index
      %c0_41 = arith.constant 0 : index
      %38 = vector.load %arg9[%c0_40, %c0_41] : memref<1x128xf32, #tpu.memory_space<vmem>>, vector<1x128xf32>
      tpu.vector_store %arg9[%c0_40, %c0_41], %37 {strides = array<i32>} : memref<1x128xf32, #tpu.memory_space<vmem>>, vector<1x128xf32>,
      %cst_42 = arith.constant 0.000000e+00 : f32
      %39 = vector.broadcast %cst_42 : f32 to vector<1x128xf32>
      %c0_43 = arith.constant 0 : index
      %c0_44 = arith.constant 0 : index
      %40 = vector.load %arg10[%c0_43, %c0_44] : memref<1x128xf32, #tpu.memory_space<vmem>>, vector<1x128xf32>
      tpu.vector_store %arg10[%c0_43, %c0_44], %39 {strides = array<i32>} : memref<1x128xf32, #tpu.memory_space<vmem>>, vector<1x128xf32>,
    } else {
    }
    %c0 = arith.constant 0 : index
    %c0_1 = arith.constant 0 : index
    %3 = vector.load %arg1[%c0, %c0_1] : memref<128x72xbf16, #tpu.memory_space<vmem>>, vector<128x72xbf16>
    %c0_2 = arith.constant 0 : index
    %c0_3 = arith.constant 0 : index
    %4 = vector.load %arg2[%c0_2, %c0_3] : memref<72x128xbf16, #tpu.memory_space<vmem>>, vector<72x128xbf16>
    %cst = arith.constant dense<0.000000e+00> : vector<128x128xf32>
    %5 = tpu.matmul %3, %4, %cst {dimension_numbers = #tpu.dot_dimension_numbers<[1], [0], [0], [1], [0, 0, 1, 1], [], []>} : vector<128x72xbf16>, vector<72x128xbf16>, vector<128x128xf32> -> vector<128x128xf32>
    %c0_4 = arith.constant 0 : index
    %c0_5 = arith.constant 0 : index
    %6 = vector.load %arg3[%c0_4, %c0_5] : memref<128x4xbf16, #tpu.memory_space<vmem>>, vector<128x4xbf16>
    %c0_6 = arith.constant 0 : index
    %c0_7 = arith.constant 0 : index
    %7 = vector.load %arg4[%c0_6, %c0_7] : memref<4x128xbf16, #tpu.memory_space<vmem>>, vector<4x128xbf16>
    %cst_8 = arith.constant dense<0.000000e+00> : vector<128x128xf32>
    %8 = tpu.matmul %6, %7, %cst_8 {dimension_numbers = #tpu.dot_dimension_numbers<[1], [0], [0], [1], [0, 0, 1, 1], [], []>} : vector<128x4xbf16>, vector<4x128xbf16>, vector<128x128xf32> -> vector<128x128xf32>
    %c0_9 = arith.constant 0 : index
    %c0_10 = arith.constant 0 : index
    %9 = vector.load %arg5[%c0_9, %c0_10] : memref<128x128xf32, #tpu.memory_space<vmem>>, vector<128x128xf32>
    tpu.vector_store %arg5[%c0_9, %c0_10], %5 {strides = array<i32>} : memref<128x128xf32, #tpu.memory_space<vmem>>, vector<128x128xf32>,
    %c0_11 = arith.constant 0 : index
    %c0_12 = arith.constant 0 : index
    %10 = vector.load %arg6[%c0_11, %c0_12] : memref<128x128xf32, #tpu.memory_space<vmem>>, vector<128x128xf32>
    tpu.vector_store %arg6[%c0_11, %c0_12], %8 {strides = array<i32>} : memref<128x128xf32, #tpu.memory_space<vmem>>, vector<128x128xf32>,
    %c0_13 = arith.constant 0 : index
    %c0_14 = arith.constant 0 : index
    %11 = vector.load %arg7[%c0_13, %c0_14] : memref<1x128xf32, #tpu.memory_space<vmem>>, vector<1x128xf32>
    %cst_15 = arith.constant dense<0.000000e+00> : vector<128xf32>
    %12 = vector.multi_reduction <add>, %5, %cst_15 [0] : vector<128x128xf32> to vector<128xf32>
    %13 = vector.shape_cast %12 : vector<128xf32> to vector<1x128xf32>
    %14 = arith.addf %11, %13 : vector<1x128xf32>
    %c0_16 = arith.constant 0 : index
    %c0_17 = arith.constant 0 : index
    %15 = vector.load %arg7[%c0_16, %c0_17] : memref<1x128xf32, #tpu.memory_space<vmem>>, vector<1x128xf32>
    tpu.vector_store %arg7[%c0_16, %c0_17], %14 {strides = array<i32>} : memref<1x128xf32, #tpu.memory_space<vmem>>, vector<1x128xf32>,
    %c0_18 = arith.constant 0 : index
    %c0_19 = arith.constant 0 : index
    %16 = vector.load %arg8[%c0_18, %c0_19] : memref<1x128xf32, #tpu.memory_space<vmem>>, vector<1x128xf32>
    %17 = arith.mulf %5, %5 : vector<128x128xf32>
    %cst_20 = arith.constant dense<0.000000e+00> : vector<128xf32>
    %18 = vector.multi_reduction <add>, %17, %cst_20 [0] : vector<128x128xf32> to vector<128xf32>
    %19 = vector.shape_cast %18 : vector<128xf32> to vector<1x128xf32>
    %20 = arith.addf %16, %19 : vector<1x128xf32>
    %c0_21 = arith.constant 0 : index
    %c0_22 = arith.constant 0 : index
    %21 = vector.load %arg8[%c0_21, %c0_22] : memref<1x128xf32, #tpu.memory_space<vmem>>, vector<1x128xf32>
    tpu.vector_store %arg8[%c0_21, %c0_22], %20 {strides = array<i32>} : memref<1x128xf32, #tpu.memory_space<vmem>>, vector<1x128xf32>,
    %c0_23 = arith.constant 0 : index
    %c0_24 = arith.constant 0 : index
    %22 = vector.load %arg9[%c0_23, %c0_24] : memref<1x128xf32, #tpu.memory_space<vmem>>, vector<1x128xf32>
    %cst_25 = arith.constant dense<0.000000e+00> : vector<128xf32>
    %23 = vector.multi_reduction <add>, %8, %cst_25 [0] : vector<128x128xf32> to vector<128xf32>
    %24 = vector.shape_cast %23 : vector<128xf32> to vector<1x128xf32>
    %25 = arith.addf %22, %24 : vector<1x128xf32>
    %c0_26 = arith.constant 0 : index
    %c0_27 = arith.constant 0 : index
    %26 = vector.load %arg9[%c0_26, %c0_27] : memref<1x128xf32, #tpu.memory_space<vmem>>, vector<1x128xf32>
    tpu.vector_store %arg9[%c0_26, %c0_27], %25 {strides = array<i32>} : memref<1x128xf32, #tpu.memory_space<vmem>>, vector<1x128xf32>,
    %c0_28 = arith.constant 0 : index
    %c0_29 = arith.constant 0 : index
    %27 = vector.load %arg10[%c0_28, %c0_29] : memref<1x128xf32, #tpu.memory_space<vmem>>, vector<1x128xf32>
    %28 = arith.mulf %8, %8 : vector<128x128xf32>
    %cst_30 = arith.constant dense<0.000000e+00> : vector<128xf32>
    %29 = vector.multi_reduction <add>, %28, %cst_30 [0] : vector<128x128xf32> to vector<128xf32>
    %30 = vector.shape_cast %29 : vector<128xf32> to vector<1x128xf32>
    %31 = arith.addf %27, %30 : vector<1x128xf32>
    %c0_31 = arith.constant 0 : index
    %c0_32 = arith.constant 0 : index
    %32 = vector.load %arg10[%c0_31, %c0_32] : memref<1x128xf32, #tpu.memory_space<vmem>>, vector<1x128xf32>
    tpu.vector_store %arg10[%c0_31, %c0_32], %31 {strides = array<i32>} : memref<1x128xf32, #tpu.memory_space<vmem>>, vector<1x128xf32>,
    return
  }
  func.func @transform_0(%arg0: i32) -> (i32, i32) {
    %c0_i32 = arith.constant 0 : i32
    %c0_i32_0 = arith.constant 0 : i32
    return %arg0, %c0_i32 : i32, i32
  }
  func.func @transform_1(%arg0: i32) -> (i32, i32) {
    %c0_i32 = arith.constant 0 : i32
    %c0_i32_0 = arith.constant 0 : i32
    %c0_i32_1 = arith.constant 0 : i32
    return %c0_i32, %c0_i32_0 : i32, i32
  }
  func.func @transform_2(%arg0: i32) -> (i32, i32) {
    %c0_i32 = arith.constant 0 : i32
    %c0_i32_0 = arith.constant 0 : i32
    return %arg0, %c0_i32 : i32, i32
  }
  func.func @transform_3(%arg0: i32) -> (i32, i32) {
    %c0_i32 = arith.constant 0 : i32
    %c0_i32_0 = arith.constant 0 : i32
    %c0_i32_1 = arith.constant 0 : i32
    return %c0_i32, %c0_i32_0 : i32, i32
  }
  func.func @transform_4(%arg0: i32) -> (i32, i32) {
    %c0_i32 = arith.constant 0 : i32
    %c0_i32_0 = arith.constant 0 : i32
    return %arg0, %c0_i32 : i32, i32
  }
  func.func @transform_5(%arg0: i32) -> (i32, i32) {
    %c0_i32 = arith.constant 0 : i32
    %c0_i32_0 = arith.constant 0 : i32
    return %arg0, %c0_i32 : i32, i32
  }
  func.func @transform_6(%arg0: i32) -> (i32, i32) {
    %c0_i32 = arith.constant 0 : i32
    %c0_i32_0 = arith.constant 0 : i32
    %c0_i32_1 = arith.constant 0 : i32
    return %c0_i32, %c0_i32_0 : i32, i32
  }
  func.func @transform_7(%arg0: i32) -> (i32, i32) {
    %c0_i32 = arith.constant 0 : i32
    %c0_i32_0 = arith.constant 0 : i32
    %c0_i32_1 = arith.constant 0 : i32
    return %c0_i32, %c0_i32_0 : i32, i32
  }
  func.func @transform_8(%arg0: i32) -> (i32, i32) {
    %c0_i32 = arith.constant 0 : i32
    %c0_i32_0 = arith.constant 0 : i32
    %c0_i32_1 = arith.constant 0 : i32
    return %c0_i32, %c0_i32_0 : i32, i32
  }
  func.func @transform_9(%arg0: i32) -> (i32, i32) {
    %c0_i32 = arith.constant 0 : i32
    %c0_i32_0 = arith.constant 0 : i32
    %c0_i32_1 = arith.constant 0 : i32
    return %c0_i32, %c0_i32_0 : i32, i32
  }
}

module attributes {stable_mosaic.version = 11 : i64} {
  func.func @bn_add_relu_proj_kernel(%arg0: i32, %arg1: memref<128x128xf32, #tpu.memory_space<vmem>>, %arg2: memref<128x128xf32, #tpu.memory_space<vmem>>, %arg3: memref<1x128xf32, #tpu.memory_space<vmem>>, %arg4: memref<1x128xf32, #tpu.memory_space<vmem>>, %arg5: memref<1x128xf32, #tpu.memory_space<vmem>>, %arg6: memref<1x128xf32, #tpu.memory_space<vmem>>, %arg7: memref<128x128xf32, #tpu.memory_space<vmem>>) attributes {dimension_semantics = [#tpu.dimension_semantics<parallel>], iteration_bounds = array<i64: 1>, scalar_prefetch = 0 : i64, scratch_operands = 0 : i64, tpu.core_type = #tpu.core_type<tc>, window_params = [{transform_indices = @transform_0, window_bounds = array<i64: 128, 128>}, {transform_indices = @transform_1, window_bounds = array<i64: 128, 128>}, {pipeline_mode = #tpu.pipeline_mode<synchronous>, transform_indices = @transform_2, window_bounds = array<i64: 1, 128>}, {pipeline_mode = #tpu.pipeline_mode<synchronous>, transform_indices = @transform_3, window_bounds = array<i64: 1, 128>}, {pipeline_mode = #tpu.pipeline_mode<synchronous>, transform_indices = @transform_4, window_bounds = array<i64: 1, 128>}, {pipeline_mode = #tpu.pipeline_mode<synchronous>, transform_indices = @transform_5, window_bounds = array<i64: 1, 128>}, {transform_indices = @transform_6, window_bounds = array<i64: 128, 128>}]} {
    %c0 = arith.constant 0 : index
    %c0_0 = arith.constant 0 : index
    %0 = vector.load %arg1[%c0, %c0_0] : memref<128x128xf32, #tpu.memory_space<vmem>>, vector<128x128xf32>
    %c0_1 = arith.constant 0 : index
    %c0_2 = arith.constant 0 : index
    %1 = vector.load %arg3[%c0_1, %c0_2] : memref<1x128xf32, #tpu.memory_space<vmem>>, vector<1x128xf32>
    %2 = vector.broadcast %1 : vector<1x128xf32> to vector<128x128xf32>
    %3 = arith.mulf %0, %2 : vector<128x128xf32>
    %c0_3 = arith.constant 0 : index
    %c0_4 = arith.constant 0 : index
    %4 = vector.load %arg4[%c0_3, %c0_4] : memref<1x128xf32, #tpu.memory_space<vmem>>, vector<1x128xf32>
    %5 = vector.broadcast %4 : vector<1x128xf32> to vector<128x128xf32>
    %6 = arith.addf %3, %5 : vector<128x128xf32>
    %c0_5 = arith.constant 0 : index
    %c0_6 = arith.constant 0 : index
    %7 = vector.load %arg2[%c0_5, %c0_6] : memref<128x128xf32, #tpu.memory_space<vmem>>, vector<128x128xf32>
    %c0_7 = arith.constant 0 : index
    %c0_8 = arith.constant 0 : index
    %8 = vector.load %arg5[%c0_7, %c0_8] : memref<1x128xf32, #tpu.memory_space<vmem>>, vector<1x128xf32>
    %9 = vector.broadcast %8 : vector<1x128xf32> to vector<128x128xf32>
    %10 = arith.mulf %7, %9 : vector<128x128xf32>
    %11 = arith.addf %6, %10 : vector<128x128xf32>
    %c0_9 = arith.constant 0 : index
    %c0_10 = arith.constant 0 : index
    %12 = vector.load %arg6[%c0_9, %c0_10] : memref<1x128xf32, #tpu.memory_space<vmem>>, vector<1x128xf32>
    %13 = vector.broadcast %12 : vector<1x128xf32> to vector<128x128xf32>
    %14 = arith.addf %11, %13 : vector<128x128xf32>
    %cst = arith.constant 0.000000e+00 : f32
    %15 = vector.broadcast %cst : f32 to vector<128x128xf32>
    %16 = arith.maximumf %14, %15 : vector<128x128xf32>
    %c0_11 = arith.constant 0 : index
    %c0_12 = arith.constant 0 : index
    %17 = vector.load %arg7[%c0_11, %c0_12] : memref<128x128xf32, #tpu.memory_space<vmem>>, vector<128x128xf32>
    tpu.vector_store %arg7[%c0_11, %c0_12], %16 {strides = array<i32>} : memref<128x128xf32, #tpu.memory_space<vmem>>, vector<128x128xf32>,
    return
  }
  func.func @transform_0(%arg0: i32) -> (i32, i32) {
    %c0_i32 = arith.constant 0 : i32
    %c0_i32_0 = arith.constant 0 : i32
    return %arg0, %c0_i32 : i32, i32
  }
  func.func @transform_1(%arg0: i32) -> (i32, i32) {
    %c0_i32 = arith.constant 0 : i32
    %c0_i32_0 = arith.constant 0 : i32
    return %arg0, %c0_i32 : i32, i32
  }
  func.func @transform_2(%arg0: i32) -> (i32, i32) {
    %c0_i32 = arith.constant 0 : i32
    %c0_i32_0 = arith.constant 0 : i32
    %c0_i32_1 = arith.constant 0 : i32
    return %c0_i32, %c0_i32_0 : i32, i32
  }
  func.func @transform_3(%arg0: i32) -> (i32, i32) {
    %c0_i32 = arith.constant 0 : i32
    %c0_i32_0 = arith.constant 0 : i32
    %c0_i32_1 = arith.constant 0 : i32
    return %c0_i32, %c0_i32_0 : i32, i32
  }
  func.func @transform_4(%arg0: i32) -> (i32, i32) {
    %c0_i32 = arith.constant 0 : i32
    %c0_i32_0 = arith.constant 0 : i32
    %c0_i32_1 = arith.constant 0 : i32
    return %c0_i32, %c0_i32_0 : i32, i32
  }
  func.func @transform_5(%arg0: i32) -> (i32, i32) {
    %c0_i32 = arith.constant 0 : i32
    %c0_i32_0 = arith.constant 0 : i32
    %c0_i32_1 = arith.constant 0 : i32
    return %c0_i32, %c0_i32_0 : i32, i32
  }
  func.func @transform_6(%arg0: i32) -> (i32, i32) {
    %c0_i32 = arith.constant 0 : i32
    %c0_i32_0 = arith.constant 0 : i32
    return %arg0, %c0_i32 : i32, i32
  }
}

</mosaic_0001>

<bundles_post_ra>
// kernel: basic_block_forward.5
= control target key start
LH: loop header
LB: loop body
LE: loop exit
PB: predicated region body
PF: predicated region fallthrough
CT: control target
= control target key end

     0   :  { %s391_s0 = inlined_call_operand.vmem [shape: f32[128,128], index: 0, kind: input, shape index: {}]   ;;  %s392_s1 = inlined_call_operand.vmem [shape: f32[1,128], index: 1, kind: input, shape index: {}]   ;;  %s393_s2 = inlined_call_operand.vmem [shape: f32[1,128], index: 2, kind: input, shape index: {}]   ;;  %s394_s3 = inlined_call_operand.vmem [shape: bf16[128,128], index: 3, kind: output, shape index: {}]  }
   0x1   :  { %v14_v0 = vld [vmem:[%s391_s0] sm:$0xff]  ;;  %v15_v1 = vld [vmem:[%s391_s0 + $0x8] sm:$0xff]  ;;  %v16_v6 = vld [vmem:[%s391_s0 + $0x10] sm:$0xff] }
   0x2   :  { %v286_v2 = vld [vmem:[%s392_s1] ss:$0 sm:$0xff]  ;;  %v17_v7 = vld [vmem:[%s391_s0 + $0x18] sm:$0xff]  ;;  %v19_v11 = vld [vmem:[%s391_s0 + $0x28] sm:$0xff] }
   0x3   :  { %v37_v3 = vmul.f32 %v286_v2, %v14_v0  ;;  %v38_v4 = vmul.f32 %v286_v2, %v15_v1  ;;  %v293_v5 = vld [vmem:[%s393_s2] ss:$0 sm:$0xff]  ;;  %v39_v8 = vmul.f32 %v286_v2, %v16_v6  ;;  %v40_v9 = vmul.f32 %v286_v2, %v17_v7  ;;  %v20_v12 = vld [vmem:[%s391_s0 + $0x30] sm:$0xff]  ;;  %v21_v17 = vld [vmem:[%s391_s0 + $0x38] sm:$0xff] }
   0x4   :  { %v18_v10 = vld [vmem:[%s391_s0 + $0x20] sm:$0xff]  ;;  %v42_v16 = vmul.f32 %v286_v2, %v19_v11  ;;  %v43_v20 = vmul.f32 %v286_v2, %v20_v12  ;;  %v44_v21 = vmul.f32 %v286_v2, %v21_v17  ;;  %v23_v27 = vld [vmem:[%s391_s0 + $0x48] sm:$0xff]  ;;  %v24_v32 = vld [vmem:[%s391_s0 + $0x50] sm:$0xff] }
   0x5   :  { %v60_v13 = vadd.f32 %v293_v5, %v37_v3  ;;  %v61_v14 = vadd.f32 %v293_v5, %v38_v4  ;;  %v41_v15 = vmul.f32 %v286_v2, %v18_v10  ;;  %v62_v18 = vadd.f32 %v293_v5, %v39_v8  ;;  %v22_v22 = vld [vmem:[%s391_s0 + $0x40] sm:$0xff]  ;;  %v25_v33 = vld [vmem:[%s391_s0 + $0x58] sm:$0xff]  ;;  %v27_v39 = vld [vmem:[%s391_s0 + $0x68] sm:$0xff] }
   0x6   :  { %v63_v19 = vadd.f32 %v293_v5, %v40_v9  ;;  %v65_v26 = vadd.f32 %v293_v5, %v42_v16  ;;  %v66_v30 = vadd.f32 %v293_v5, %v43_v20  ;;  %v67_v31 = vadd.f32 %v293_v5, %v44_v21  ;;  %v26_v38 = vld [vmem:[%s391_s0 + $0x60] sm:$0xff]  ;;  %v28_v44 = vld [vmem:[%s391_s0 + $0x70] sm:$0xff]  ;;  %v29_v49 = vld [vmem:[%s391_s0 + $0x78] sm:$0xff] }
   0x7   :  { %v76_v23 = vmax.f32 %v60_v13, 0.0  ;;  %v77_v24 = vmax.f32 %v61_v14, 0.0  ;;  %v64_v25 = vadd.f32 %v293_v5, %v41_v15  ;;  %v78_v28 = vmax.f32 %v62_v18, 0.0 }
   0x8   :  { %v79_v29 = vmax.f32 %v63_v19, 0.0  ;;  %v81_v36 = vmax.f32 %v65_v26, 0.0  ;;  %v45_v37 = vmul.f32 %v286_v2, %v22_v22  ;;  %v82_v41 = vmax.f32 %v66_v30, 0.0 }
   0x9   :  { %v213_v34 = vpack.c.bf16 %v77_v24, %v76_v23  ;;  %v80_v35 = vmax.f32 %v64_v25, 0.0  ;;  %v83_v42 = vmax.f32 %v67_v31, 0.0  ;;  %v46_v43 = vmul.f32 %v286_v2, %v23_v27 }
   0xa   :  { %v218_v40 = vpack.c.bf16 %v79_v29, %v78_v28  ;;  %v68_v46 = vadd.f32 %v293_v5, %v45_v37  ;;  %v47_v47 = vmul.f32 %v286_v2, %v24_v32  ;;  %v48_v48 = vmul.f32 %v286_v2, %v25_v33 }
   0xb   :  { %214 = vst [vmem:[%s394_s3] sm:$0xff] %v213_v34   ;;  %v223_v45 = vpack.c.bf16 %v81_v36, %v80_v35  ;;  %v228_v50 = vpack.c.bf16 %v83_v42, %v82_v41  ;;  %v69_v51 = vadd.f32 %v293_v5, %v46_v43  ;;  %v49_v52 = vmul.f32 %v286_v2, %v26_v38 }
   0xc   :  { %250 = vst [vmem:[%s394_s3 + $0x8] sm:$0xff] %v218_v40   ;;  %v50_v53 = vmul.f32 %v286_v2, %v27_v39  ;;  %v84_v54 = vmax.f32 %v68_v46, 0.0  ;;  %v70_v55 = vadd.f32 %v293_v5, %v47_v47  ;;  %v71_v56 = vadd.f32 %v293_v5, %v48_v48 }
   0xd   :  { %251 = vst [vmem:[%s394_s3 + $0x10] sm:$0xff] %v223_v45   ;;  %v51_v57 = vmul.f32 %v286_v2, %v28_v44  ;;  %252 = vst [vmem:[%s394_s3 + $0x18] sm:$0xff] %v228_v50   ;;  %v85_v58 = vmax.f32 %v69_v51, 0.0  ;;  %v72_v59 = vadd.f32 %v293_v5, %v49_v52  ;;  %v52_v61 = vmul.f32 %v286_v2, %v29_v49 }
   0xe   :  { %v73_v60 = vadd.f32 %v293_v5, %v50_v53  ;;  %v86_v62 = vmax.f32 %v70_v55, 0.0  ;;  %v87_v63 = vmax.f32 %v71_v56, 0.0 }
   0xf   :  { %v74_v0 = vadd.f32 %v293_v5, %v51_v57  ;;  %v233_v1 = vpack.c.bf16 %v85_v58, %v84_v54  ;;  %v88_v3 = vmax.f32 %v72_v59, 0.0  ;;  %v75_v6 = vadd.f32 %v293_v5, %v52_v61 }
  0x10   :  { %v89_v4 = vmax.f32 %v73_v60, 0.0  ;;  %v238_v7 = vpack.c.bf16 %v87_v63, %v86_v62 }
  0x11   :  { %v90_v8 = vmax.f32 %v74_v0, 0.0  ;;  %253 = vst [vmem:[%s394_s3 + $0x20] sm:$0xff] %v233_v1   ;;  %v91_v10 = vmax.f32 %v75_v6, 0.0 }
  0x12   :  { %v243_v9 = vpack.c.bf16 %v89_v4, %v88_v3  ;;  %254 = vst [vmem:[%s394_s3 + $0x28] sm:$0xff] %v238_v7  }
  0x13   :  { %v248_v2 = vpack.c.bf16 %v91_v10, %v90_v8 }
  0x14   :  { %255 = vst [vmem:[%s394_s3 + $0x30] sm:$0xff] %v243_v9  }
  0x15   :  { %256 = vst [vmem:[%s394_s3 + $0x38] sm:$0xff] %v248_v2  }

// kernel: basic_block_forward.4
= control target key start
LH: loop header
LB: loop body
LE: loop exit
PB: predicated region body
PF: predicated region fallthrough
CT: control target
= control target key end

     0   :  { %vm122_vm0 = vcmask 1041408   ;;  %vm97_vm1 = vcmask 293888   ;;  %v387_v12 = vmov 0.0   ;;  %s520_s1 = inlined_call_operand.vmem [shape: bf16[36,128], index: 1, kind: input, shape index: {}]   ;;  %s521_s0 = inlined_call_operand.vmem [shape: bf16[128,36], index: 0, kind: input, shape index: {}]   ;;  %s522_s3 = inlined_call_operand.vmem [shape: f32[1,128], index: 3, kind: output, shape index: {1}]   ;;  %s523_s4 = inlined_call_operand.vmem [shape: f32[1,128], index: 4, kind: output, shape index: {2}]   ;;  %s524_s2 = inlined_call_operand.vmem [shape: f32[128,128], index: 2, kind: output, shape index: {0}]  }
   0x1   :  { %v376_v0 = vld [vmem:[%s520_s1 + $0x10] ss:$0 sps:$4 sm:$0x33]   ;;  %v377_v1 = vld [vmem:[%s520_s1 + $0x8] sm:$0xff]   ;;  %v379_v3 = vld [vmem:[%s521_s0] sm:$0xff]   ;;  %19 = vst [vmem:[%s522_s3] sm:$0x1] %v387_v12 }
   0x2   :  { %373 = vmatprep.subr.msk.bf16.mxu0 %vm122_vm0, %v376_v0  ;;  %v124_v2 = vsel %vm122_vm0, %v376_v0, 0  ;;  %374 = vmatprep.subr.msk.bf16.mxu1 %vm122_vm0, %v376_v0  ;;  %v378_v4 = vld [vmem:[%s520_s1] sm:$0xff]   ;;  %v380_v6 = vld [vmem:[%s521_s0 + $0x8] sm:$0xff]   ;;  %v381_v8 = vld [vmem:[%s521_s0 + $0x10] sm:$0xff]   ;;  %20 = vst [vmem:[%s523_s4] sm:$0x1] %v387_v12 }
   0x3   :  { %346 = vmatpush3.bf16.msra.mxu0 %v124_v2  ;;  %370 = vmatpush3.bf16.msra.mxu1 %v124_v2  ;;  %v383_v5 = vld [vmem:[%s521_s0 + $0x20] sm:$0xff]   ;;  %v384_v7 = vld [vmem:[%s521_s0 + $0x28] sm:$0xff]   ;;  %v385_v9 = vld [vmem:[%s521_s0 + $0x30] sm:$0xff]  }
   0x4   :  { %347 = vmatprep.subr.bf16.mxu0 %v377_v1  ;;  %368 = vmatprep.subr.bf16.mxu1 %v377_v1  ;;  %v382_v10 = vld [vmem:[%s521_s0 + $0x18] sm:$0xff]  }
   0x5   :  { %351 = vmatprep.mubr.msk.bf16.mxu0 %vm97_vm1, %v379_v3  ;;  %359 = vmatprep.mubr.msk.bf16.mxu1 %vm97_vm1, %v383_v5  ;;  %v386_v11 = vld [vmem:[%s521_s0 + $0x38] sm:$0xff]  }
   0x7   :  { %348 = vmatpush3.bf16.msra.mxu0 %v377_v1  ;;  %371 = vmatpush3.bf16.msra.mxu1 %v377_v1 }
   0x8   :  { %349 = vmatprep.subr.bf16.mxu0 %v378_v4  ;;  %369 = vmatprep.subr.bf16.mxu1 %v378_v4 }
   0xb   :  { %350 = vmatpush3.bf16.msra.mxu0 %v378_v4  ;;  %372 = vmatpush3.bf16.msra.mxu1 %v378_v4 }
   0xe   :  { %352 = vmatmul.mubr.msk.bf16.vlgmr.msra.gmra.mxu0 %vm97_vm1, %v380_v6  ;;  %360 = vmatmul.mubr.msk.bf16.vlgmr.msra.gmra.mxu1 %vm97_vm1, %v384_v7 }
   0xf   :  { %355 = vmatprep.mubr.msk.bf16.mxu0 %vm97_vm1, %v381_v8  ;;  %363 = vmatprep.mubr.msk.bf16.mxu1 %vm97_vm1, %v385_v9 }
  0x16   :  { %356 = vmatmul.mubr.msk.bf16.gmra.mxu0 %vm97_vm1, %v382_v10  ;;  %364 = vmatmul.mubr.msk.bf16.gmra.mxu1 %vm97_vm1, %v386_v11 }
  0xce   :  { %v353_v13 = vpop.f32.mrf.mxu0  ;;  %v361_v14 = vpop.f32.mrf.mxu1 }
  0xcf   :  { %225 = vst [vmem:[%s524_s2 + $0x10] sm:$0xff] %v353_v13  ;;  %233 = vst [vmem:[%s524_s2 + $0x50] sm:$0xff] %v361_v14  ;;  %v266_v26 = vmul.f32 %v353_v13, %v353_v13  ;;  %v274_v56 = vmul.f32 %v361_v14, %v361_v14 }
  0xd0   :  { %v160_v15 = vpop.f32.mrf.mxu0  ;;  %v192_v16 = vpop.f32.mrf.mxu1 }
  0xd1   :  { %223 = vst [vmem:[%s524_s2] sm:$0xff] %v160_v15  ;;  %231 = vst [vmem:[%s524_s2 + $0x40] sm:$0xff] %v192_v16  ;;  %v264_v21 = vmul.f32 %v160_v15, %v160_v15  ;;  %v272_v50 = vmul.f32 %v192_v16, %v192_v16 }
  0xd2   :  { %v354_v17 = vpop.f32.mrf.mxu0  ;;  %v362_v18 = vpop.f32.mrf.mxu1 }
  0xd3   :  { %226 = vst [vmem:[%s524_s2 + $0x18] sm:$0xff] %v354_v17  ;;  %234 = vst [vmem:[%s524_s2 + $0x58] sm:$0xff] %v362_v18  ;;  %v267_v31 = vmul.f32 %v354_v17, %v354_v17  ;;  %v275_v59 = vmul.f32 %v362_v18, %v362_v18 }
  0xd4   :  { %v163_v19 = vpop.f32.mrf.mxu0  ;;  %v195_v20 = vpop.f32.mrf.mxu1 }
  0xd5   :  { %224 = vst [vmem:[%s524_s2 + $0x8] sm:$0xff] %v163_v19  ;;  %v240_v22 = vadd.f32 %v163_v19, %v160_v15  ;;  %v265_v23 = vmul.f32 %v163_v19, %v163_v19  ;;  %232 = vst [vmem:[%s524_s2 + $0x48] sm:$0xff] %v195_v20  ;;  %v273_v54 = vmul.f32 %v195_v20, %v195_v20 }
  0xd6   :  { %v357_v24 = vpop.f32.mrf.mxu0  ;;  %v365_v25 = vpop.f32.mrf.mxu1 }
  0xd7   :  { %v241_v27 = vadd.f32 %v353_v13, %v240_v22  ;;  %v280_v28 = vadd.f32 %v265_v23, %v264_v21  ;;  %229 = vst [vmem:[%s524_s2 + $0x30] sm:$0xff] %v357_v24  ;;  %237 = vst [vmem:[%s524_s2 + $0x70] sm:$0xff] %v365_v25  ;;  %v270_v44 = vmul.f32 %v357_v24, %v357_v24  ;;  %v263_v23 = vld [vmem:[%s523_s4] sm:$0x1] }
  0xd8   :  { %v176_v29 = vpop.f32.mrf.mxu0  ;;  %v208_v30 = vpop.f32.mrf.mxu1  ;;  %v278_v4 = vmul.f32 %v365_v25, %v365_v25 }
  0xd9   :  { %v281_v32 = vadd.f32 %v280_v28, %v266_v26  ;;  %227 = vst [vmem:[%s524_s2 + $0x20] sm:$0xff] %v176_v29  ;;  %v242_v33 = vadd.f32 %v354_v17, %v241_v27  ;;  %235 = vst [vmem:[%s524_s2 + $0x60] sm:$0xff] %v208_v30  ;;  %v268_v37 = vmul.f32 %v176_v29, %v176_v29 }
  0xda   :  { %v358_v34 = vpop.f32.mrf.mxu0  ;;  %v366_v35 = vpop.f32.mrf.mxu1  ;;  %v276_v63 = vmul.f32 %v208_v30, %v208_v30 }
  0xdb   :  { %v243_v36 = vadd.f32 %v242_v33, %v176_v29  ;;  %v282_v38 = vadd.f32 %v281_v32, %v267_v31  ;;  %230 = vst [vmem:[%s524_s2 + $0x38] sm:$0xff] %v358_v34  ;;  %238 = vst [vmem:[%s524_s2 + $0x78] sm:$0xff] %v366_v35  ;;  %v271_v47 = vmul.f32 %v358_v34, %v358_v34 }
  0xdc   :  { %v179_v39 = vpop.f32.mrf.mxu0  ;;  %v211_v40 = vpop.f32.mrf.mxu1  ;;  %v279_v7 = vmul.f32 %v366_v35, %v366_v35 }
  0xdd   :  { %v283_v41 = vadd.f32 %v282_v38, %v268_v37  ;;  %228 = vst [vmem:[%s524_s2 + $0x28] sm:$0xff] %v179_v39  ;;  %v244_v42 = vadd.f32 %v243_v36, %v179_v39  ;;  %v269_v43 = vmul.f32 %v179_v39, %v179_v39  ;;  %236 = vst [vmem:[%s524_s2 + $0x68] sm:$0xff] %v211_v40 }
  0xde   :  { %v277_v3 = vmul.f32 %v211_v40, %v211_v40 }
  0xdf   :  { %v245_v45 = vadd.f32 %v357_v24, %v244_v42  ;;  %v284_v46 = vadd.f32 %v283_v41, %v269_v43 }
  0xe1   :  { %v246_v48 = vadd.f32 %v358_v34, %v245_v45  ;;  %v285_v49 = vadd.f32 %v284_v46, %v270_v44 }
  0xe3   :  { %v286_v51 = vadd.f32 %v285_v49, %v271_v47  ;;  %v247_v52 = vadd.f32 %v246_v48, %v192_v16 }
  0xe5   :  { %v248_v53 = vadd.f32 %v247_v52, %v195_v20  ;;  %v287_v55 = vadd.f32 %v286_v51, %v272_v50  ;;  %v239_v20 = vld [vmem:[%s522_s3] sm:$0x1] }
  0xe7   :  { %v249_v57 = vadd.f32 %v361_v14, %v248_v53  ;;  %v288_v58 = vadd.f32 %v287_v55, %v273_v54 }
  0xe9   :  { %v289_v60 = vadd.f32 %v288_v58, %v274_v56  ;;  %v250_v61 = vadd.f32 %v362_v18, %v249_v57 }
  0xeb   :  { %v251_v62 = vadd.f32 %v250_v61, %v208_v30  ;;  %v290_v0 = vadd.f32 %v289_v60, %v275_v59 }
  0xed   :  { %v291_v1 = vadd.f32 %v290_v0, %v276_v63  ;;  %v252_v2 = vadd.f32 %v251_v62, %v211_v40 }
  0xef   :  { %v253_v5 = vadd.f32 %v365_v25, %v252_v2  ;;  %v292_v6 = vadd.f32 %v291_v1, %v277_v3 }
  0xf1   :  { %v254_v8 = vadd.f32 %v366_v35, %v253_v5  ;;  %v293_v9 = vadd.f32 %v292_v6, %v278_v4 }
  0xf3   :  { %v255_v10 = vrot.slane %v254_v8, 4  ;;  %v294_v11 = vadd.f32 %v293_v9, %v279_v7 }
  0xf5   :  { %v256_v12 = vadd.f32 %v255_v10, %v254_v8  ;;  %v295_v13 = vrot.slane %v294_v11, 4 }
  0xf7   :  { %v257_v14 = vrot.slane %v256_v12, 2  ;;  %v296_v15 = vadd.f32 %v295_v13, %v294_v11 }
  0xf9   :  { %v258_v16 = vadd.f32 %v257_v14, %v256_v12  ;;  %v297_v17 = vrot.slane %v296_v15, 2 }
  0xfb   :  { %v259_v18 = vrot.slane %v258_v16, 1  ;;  %v298_v19 = vadd.f32 %v297_v17, %v296_v15 }
  0xfd   :  { %v260_v21 = vadd.f32 %v259_v18, %v258_v16  ;;  %v299_v22 = vrot.slane %v298_v19, 1 }
  0xff   :  { %v261_v24 = vadd.f32 %v260_v21, %v239_v20  ;;  %v300_v25 = vadd.f32 %v299_v22, %v298_v19 }
 0x101   :  { %262 = vst [vmem:[%s522_s3] sm:$0x1] %v261_v24  ;;  %v301_v26 = vadd.f32 %v300_v25, %v263_v23 }
 0x103   :  { %302 = vst [vmem:[%s523_s4] sm:$0x1] %v301_v26 }

// kernel: basic_block_forward.7
= control target key start
LH: loop header
LB: loop body
LE: loop exit
PB: predicated region body
PF: predicated region fallthrough
CT: control target
= control target key end

     0   :  { %s462_s0 = inlined_call_operand.vmem [shape: f32[128,128], index: 0, kind: input, shape index: {}]   ;;  %s463_s1 = inlined_call_operand.vmem [shape: f32[128,128], index: 1, kind: input, shape index: {}]   ;;  %s464_s2 = inlined_call_operand.vmem [shape: f32[1,128], index: 2, kind: input, shape index: {}]   ;;  %s465_s3 = inlined_call_operand.vmem [shape: f32[1,128], index: 3, kind: input, shape index: {}]   ;;  %s466_s4 = inlined_call_operand.vmem [shape: f32[1,128], index: 4, kind: input, shape index: {}]   ;;  %s467_s5 = inlined_call_operand.vmem [shape: f32[1,128], index: 5, kind: input, shape index: {}]   ;;  %s468_s6 = inlined_call_operand.hbm [shape: f32[128,128], index: 6, kind: output, shape index: {}]  }
   0x1   :  { %v24_v0 = vld [vmem:[%s462_s0] sm:$0xff]  ;;  %v25_v8 = vld [vmem:[%s462_s0 + $0x8] sm:$0xff]  ;;  %v26_v10 = vld [vmem:[%s462_s0 + $0x10] sm:$0xff] }
   0x2   :  { %v285_v1 = vld [vmem:[%s464_s2] ss:$0 sm:$0xff]  ;;  %v87_v9 = vld [vmem:[%s463_s1 + $0x8] sm:$0xff]  ;;  %v88_v15 = vld [vmem:[%s463_s1 + $0x10] sm:$0xff] }
   0x3   :  { %v290_v2 = vld [vmem:[%s465_s3] ss:$0 sm:$0xff]  ;;  %v47_v3 = vmul.f32 %v285_v1, %v24_v0  ;;  %v48_v12 = vmul.f32 %v285_v1, %v25_v8  ;;  %v49_v14 = vmul.f32 %v285_v1, %v26_v10  ;;  %v27_v16 = vld [vmem:[%s462_s0 + $0x18] sm:$0xff]  ;;  %v29_v23 = vld [vmem:[%s462_s0 + $0x28] sm:$0xff] }
   0x4   :  { %v86_v4 = vld [vmem:[%s463_s1] sm:$0xff]  ;;  %v89_v17 = vld [vmem:[%s463_s1 + $0x18] sm:$0xff]  ;;  %v50_v19 = vmul.f32 %v285_v1, %v27_v16  ;;  %v91_v28 = vld [vmem:[%s463_s1 + $0x28] sm:$0xff]  ;;  %v52_v33 = vmul.f32 %v285_v1, %v29_v23 }
   0x5   :  { %v299_v5 = vld [vmem:[%s466_s4] ss:$0 sm:$0xff]  ;;  %v70_v11 = vadd.f32 %v290_v2, %v47_v3  ;;  %v71_v25 = vadd.f32 %v290_v2, %v48_v12  ;;  %v72_v26 = vadd.f32 %v290_v2, %v49_v14  ;;  %v30_v29 = vld [vmem:[%s462_s0 + $0x30] sm:$0xff]  ;;  %v31_v39 = vld [vmem:[%s462_s0 + $0x38] sm:$0xff] }
   0x6   :  { %v109_v6 = vmul.f32 %v299_v5, %v86_v4  ;;  %v305_v7 = vld [vmem:[%s467_s5] ss:$0 sm:$0xff]  ;;  %v110_v13 = vmul.f32 %v299_v5, %v87_v9  ;;  %v111_v18 = vmul.f32 %v299_v5, %v88_v15  ;;  %v112_v20 = vmul.f32 %v299_v5, %v89_v17  ;;  %v92_v30 = vld [vmem:[%s463_s1 + $0x30] sm:$0xff]  ;;  %v93_v44 = vld [vmem:[%s463_s1 + $0x38] sm:$0xff] }
   0x7   :  { %v28_v21 = vld [vmem:[%s462_s0 + $0x20] sm:$0xff]  ;;  %v73_v31 = vadd.f32 %v290_v2, %v50_v19  ;;  %v114_v34 = vmul.f32 %v299_v5, %v91_v28  ;;  %v75_v41 = vadd.f32 %v290_v2, %v52_v33  ;;  %v53_v42 = vmul.f32 %v285_v1, %v30_v29  ;;  %v33_v55 = vld [vmem:[%s462_s0 + $0x48] sm:$0xff]  ;;  %v34_v3 = vld [vmem:[%s462_s0 + $0x50] sm:$0xff] }
   0x8   :  { %v90_v22 = vld [vmem:[%s463_s1 + $0x20] sm:$0xff]  ;;  %v125_v24 = vadd.f32 %v109_v6, %v70_v11  ;;  %v51_v27 = vmul.f32 %v285_v1, %v28_v21  ;;  %v126_v36 = vadd.f32 %v110_v13, %v71_v25  ;;  %v127_v37 = vadd.f32 %v111_v18, %v72_v26  ;;  %v95_v60 = vld [vmem:[%s463_s1 + $0x48] sm:$0xff]  ;;  %v96_v4 = vld [vmem:[%s463_s1 + $0x50] sm:$0xff] }
   0x9   :  { %v113_v32 = vmul.f32 %v299_v5, %v90_v22  ;;  %v128_v40 = vadd.f32 %v112_v20, %v73_v31  ;;  %v115_v43 = vmul.f32 %v299_v5, %v92_v30  ;;  %v130_v50 = vadd.f32 %v114_v34, %v75_v41  ;;  %v32_v53 = vld [vmem:[%s462_s0 + $0x40] sm:$0xff] }
   0xa   :  { %v148_v35 = vadd.f32 %v305_v7, %v125_v24  ;;  %v74_v38 = vadd.f32 %v290_v2, %v51_v27  ;;  %v149_v46 = vadd.f32 %v305_v7, %v126_v36  ;;  %v150_v47 = vadd.f32 %v305_v7, %v127_v37  ;;  %v94_v54 = vld [vmem:[%s463_s1 + $0x40] sm:$0xff] }
   0xb   :  { %v151_v49 = vadd.f32 %v305_v7, %v128_v40  ;;  %v76_v51 = vadd.f32 %v290_v2, %v53_v42  ;;  %v54_v52 = vmul.f32 %v285_v1, %v31_v39  ;;  %v116_v59 = vmul.f32 %v299_v5, %v93_v44 }
   0xc   :  { %v164_v45 = vmax.f32 %v148_v35, 0.0  ;;  %v129_v48 = vadd.f32 %v113_v32, %v74_v38  ;;  %v165_v56 = vmax.f32 %v149_v46, 0.0  ;;  %v166_v57 = vmax.f32 %v150_v47, 0.0 }
   0xd   :  { %v167_v61 = vmax.f32 %v151_v49, 0.0  ;;  %v153_v62 = vadd.f32 %v305_v7, %v130_v50  ;;  %v131_v63 = vadd.f32 %v115_v43, %v76_v51  ;;  %v77_v0 = vadd.f32 %v290_v2, %v54_v52 }
   0xe   :  { %180 = vst [vmem:[#allocation2] sm:$0xff] %v164_v45  ;;  %v152_v58 = vadd.f32 %v305_v7, %v129_v48 }
   0xf   :  { %11 = vsyncpa [#allocation3], 0  ;;  %181 = vst [vmem:[#allocation2 + $0x8] sm:$0xff] %v165_v56  ;;  %v55_v8 = vmul.f32 %v285_v1, %v32_v53  ;;  %v117_v9 = vmul.f32 %v299_v5, %v94_v54  ;;  %v56_v10 = vmul.f32 %v285_v1, %v33_v55  ;;  %v35_v11 = vld [vmem:[%s462_s0 + $0x58] sm:$0xff]  ;;  %v169_v13 = vmax.f32 %v153_v62, 0.0  ;;  %v36_v17 = vld [vmem:[%s462_s0 + $0x60] sm:$0xff] }
  0x10   :  { %182 = vst [vmem:[#allocation2 + $0x10] sm:$0xff] %v166_v57  ;;  %v168_v6 = vmax.f32 %v152_v58, 0.0  ;;  %v97_v12 = vld [vmem:[%s463_s1 + $0x58] sm:$0xff]  ;;  %183 = vst [vmem:[#allocation2 + $0x18] sm:$0xff] %v167_v61  ;;  %v154_v14 = vadd.f32 %v305_v7, %v131_v63  ;;  %v132_v15 = vadd.f32 %v116_v59, %v77_v0  ;;  %v118_v16 = vmul.f32 %v299_v5, %v95_v60  ;;  %v98_v22 = vld [vmem:[%s463_s1 + $0x60] sm:$0xff] }
  0x11   :  { %v78_v18 = vadd.f32 %v290_v2, %v55_v8  ;;  %v79_v19 = vadd.f32 %v290_v2, %v56_v10  ;;  %v57_v20 = vmul.f32 %v285_v1, %v34_v3  ;;  %v119_v21 = vmul.f32 %v299_v5, %v96_v4  ;;  %v37_v23 = vld [vmem:[%s462_s0 + $0x68] sm:$0xff]  ;;  %185 = vst [vmem:[#allocation2 + $0x28] sm:$0xff] %v169_v13  ;;  %v38_v33 = vld [vmem:[%s462_s0 + $0x70] sm:$0xff]  ;;  %v39_v47 = vld [vmem:[%s462_s0 + $0x78] sm:$0xff]  ;;  %s241_s0 = smov [#allocation2]  }
  0x12   :  { %184 = vst [vmem:[#allocation2 + $0x20] sm:$0xff] %v168_v6  ;;  %v170_v24 = vmax.f32 %v154_v14, 0.0  ;;  %v155_v25 = vadd.f32 %v305_v7, %v132_v15  ;;  %v58_v26 = vmul.f32 %v285_v1, %v35_v11  ;;  %v120_v27 = vmul.f32 %v299_v5, %v97_v12  ;;  %v99_v32 = vld [vmem:[%s463_s1 + $0x68] sm:$0xff]  ;;  %v100_v42 = vld [vmem:[%s463_s1 + $0x70] sm:$0xff]  ;;  %v101_v48 = vld [vmem:[%s463_s1 + $0x78] sm:$0xff]  ;;  %s201_s1 = sshll.u32 %s241_s0, 4  ;;  %s202_s1 = int_to_ptr.vmem [resolvable:$true] %s201_s1 }
  0x13   :  { %v133_v28 = vadd.f32 %v117_v9, %v78_v18  ;;  %v134_v29 = vadd.f32 %v118_v16, %v79_v19  ;;  %v80_v30 = vadd.f32 %v290_v2, %v57_v20  ;;  %v59_v31 = vmul.f32 %v285_v1, %v36_v17  ;;  %s219_s11 = scalar_lea.vmem %s202_s1, 2048  ;;  %p224_p1 = scmp.lt.s32.totalorder %s202_s1, %s202_s1 }
  0x14   :  { %186 = vst [vmem:[#allocation2 + $0x30] sm:$0xff] %v170_v24  ;;  %v171_v34 = vmax.f32 %v155_v25, 0.0  ;;  %v81_v35 = vadd.f32 %v290_v2, %v58_v26  ;;  %v121_v36 = vmul.f32 %v299_v5, %v98_v22  ;;  %v60_v37 = vmul.f32 %v285_v1, %v37_v23  ;;  %p220_p0 = scmp.ne.s32.totalorder %s202_s1, %s219_s11  ;;  %p225_p2 = scmp.lt.s32.totalorder %s219_s11, %s219_s11 }
  0x15   :  { %v156_v38 = vadd.f32 %v305_v7, %v133_v28  ;;  %v157_v39 = vadd.f32 %v305_v7, %v134_v29  ;;  %v135_v40 = vadd.f32 %v119_v21, %v80_v30  ;;  %v82_v41 = vadd.f32 %v290_v2, %v59_v31 }
  0x16   :  { %187 = vst [vmem:[#allocation2 + $0x38] sm:$0xff] %v171_v34  ;;  %v136_v43 = vadd.f32 %v120_v27, %v81_v35  ;;  %v83_v44 = vadd.f32 %v290_v2, %v60_v37  ;;  %v122_v45 = vmul.f32 %v299_v5, %v99_v32  ;;  %v61_v46 = vmul.f32 %v285_v1, %v38_v33  ;;  %p226_p3 = por %p225_p2, %p224_p1 }
  0x17   :  { %v172_v49 = vmax.f32 %v156_v38, 0.0  ;;  %v173_v50 = vmax.f32 %v157_v39, 0.0  ;;  %v158_v51 = vadd.f32 %v305_v7, %v135_v40  ;;  %v137_v52 = vadd.f32 %v121_v36, %v82_v41 }
  0x18   :  { %v159_v53 = vadd.f32 %v305_v7, %v136_v43  ;;  %v138_v54 = vadd.f32 %v122_v45, %v83_v44  ;;  %v84_v55 = vadd.f32 %v290_v2, %v61_v46  ;;  %v123_v56 = vmul.f32 %v299_v5, %v100_v42  ;;  %p227_p4 = pnand %p226_p3, %p220_p0 }
  0x19   :  { %188 = vst [vmem:[#allocation2 + $0x40] sm:$0xff] %v172_v49  ;;  %189 = vst [vmem:[#allocation2 + $0x48] sm:$0xff] %v173_v50  ;;  %v174_v57 = vmax.f32 %v158_v51, 0.0  ;;  %v160_v58 = vadd.f32 %v305_v7, %v137_v52  ;;  %v62_v59 = vmul.f32 %v285_v1, %v39_v47  ;;  %v124_v60 = vmul.f32 %v299_v5, %v101_v48 }
  0x1a   :  { %v175_v61 = vmax.f32 %v159_v53, 0.0  ;;  %v161_v62 = vadd.f32 %v305_v7, %v138_v54  ;;  %v139_v63 = vadd.f32 %v123_v56, %v84_v55 }
  0x1b   :  { %190 = vst [vmem:[#allocation2 + $0x50] sm:$0xff] %v174_v57  ;;  %v176_v0 = vmax.f32 %v160_v58, 0.0  ;;  %v85_v3 = vadd.f32 %v290_v2, %v62_v59 }
  0x1c   :  { %191 = vst [vmem:[#allocation2 + $0x58] sm:$0xff] %v175_v61  ;;  %v177_v4 = vmax.f32 %v161_v62, 0.0  ;;  %v162_v6 = vadd.f32 %v305_v7, %v139_v63 }
  0x1d   :  { %192 = vst [vmem:[#allocation2 + $0x60] sm:$0xff] %v176_v0  ;;  %v140_v8 = vadd.f32 %v124_v60, %v85_v3 }
  0x1e   :  { %193 = vst [vmem:[#allocation2 + $0x68] sm:$0xff] %v177_v4  ;;  %v178_v1 = vmax.f32 %v162_v6, 0.0 }
  0x1f   :  { %v163_v5 = vadd.f32 %v305_v7, %v140_v8 }
  0x20   :  { %194 = vst [vmem:[#allocation2 + $0x70] sm:$0xff] %v178_v1 }
  0x21   :  { %v179_v9 = vmax.f32 %v163_v5, 0.0 }
  0x23   :  { %195 = vst [vmem:[#allocation2 + $0x78] sm:$0xff] %v179_v9 }
  0x24   :  { %230 = shalt.err (!%p227_p4)
}
  0x25   :  { %s242_s12 = smov 128   ;;  %s243_s4 = smov 8  }
  0x26   :  { %207 = dma.vmem_to_hbm [thread:$0]  %s202_s1, 2048, %s468_s6, [#allocation3], %s242_s12, %s242_s12, %s243_s4  }
  0x27   :  { %239 = dma.done.wait [#allocation3], 2048  }
  0x28   :  { %240 = vsyncadd [#allocation3], 4294965248 }
  0x29   :  { %211 = vsyncpa [#allocation3], 1 }

// kernel: basic_block_forward.6
= control target key start
LH: loop header
LB: loop body
LE: loop exit
PB: predicated region body
PF: predicated region fallthrough
CT: control target
= control target key end

     0   :  { %vm149_vm0 = vcmask 1043456   ;;  %vm332_vm1 = vcmask 1041408   ;;  %vm307_vm2 = vcmask 31744   ;;  %vm124_vm3 = vcmask 588800   ;;  %s1009_s1 = inlined_call_operand.vmem [shape: bf16[72,128], index: 1, kind: input, shape index: {}]   ;;  %s1010_s3 = inlined_call_operand.vmem [shape: bf16[4,128], index: 3, kind: input, shape index: {}]   ;;  %s1011_s2 = inlined_call_operand.vmem [shape: bf16[128,4], index: 2, kind: input, shape index: {}]   ;;  %s1012_s0 = inlined_call_operand.vmem [shape: bf16[128,72], index: 0, kind: input, shape index: {}]   ;;  %s1013_s8 = inlined_call_operand.vmem [shape: f32[1,128], index: 8, kind: output, shape index: {4}]   ;;  %s1014_s9 = inlined_call_operand.vmem [shape: f32[1,128], index: 9, kind: output, shape index: {5}]   ;;  %s1015_s6 = inlined_call_operand.vmem [shape: f32[1,128], index: 6, kind: output, shape index: {2}]   ;;  %s1016_s7 = inlined_call_operand.vmem [shape: f32[1,128], index: 7, kind: output, shape index: {3}]   ;;  %s1017_s5 = inlined_call_operand.vmem [shape: f32[128,128], index: 5, kind: output, shape index: {1}]   ;;  %s1018_s4 = inlined_call_operand.vmem [shape: f32[128,128], index: 4, kind: output, shape index: {0}]  }
   0x1   :  { %v723_v0 = vld [vmem:[%s1009_s1 + $0x20] ss:$0 sps:$4 sm:$0xff]   ;;  %v725_v5 = vld [vmem:[%s1009_s1 + $0x18] sm:$0xff]   ;;  %v726_v6 = vld [vmem:[%s1011_s2 + $0x8] sm:$0xff]   ;;  %v744_v24 = vmov 0.0  }
   0x2   :  { %v266_v1 = vld [vmem:[%s1010_s3] sm:$0x3]  ;;  %720 = vmatprep.subr.msk.bf16.mxu0 %vm149_vm0, %v723_v0  ;;  %v151_v4 = vsel %vm149_vm0, %v723_v0, 0  ;;  %v727_v7 = vld [vmem:[%s1009_s1 + $0x10] sm:$0xff]   ;;  %v729_v9 = vld [vmem:[%s1009_s1 + $0x8] sm:$0xff]   ;;  %30 = vst [vmem:[%s1013_s8] sm:$0x1] %v744_v24 }
   0x3   :  { %721 = vmatprep.subr.msk.bf16.mxu1 %vm332_vm1, %v266_v1  ;;  %v334_v2 = vsel %vm332_vm1, %v266_v1, 0  ;;  %v724_v3 = vld [vmem:[%s1011_s2] sm:$0xff]   ;;  %677 = vmatpush3.bf16.msra.mxu0 %v151_v4  ;;  %v728_v8 = vld [vmem:[%s1011_s2 + $0x10] sm:$0xff]   ;;  %v730_v10 = vld [vmem:[%s1011_s2 + $0x18] sm:$0xff]   ;;  %31 = vst [vmem:[%s1014_s9] sm:$0x1] %v744_v24 }
   0x4   :  { %703 = vmatpush3.bf16.msra.mxu1 %v334_v2  ;;  %704 = vmatprep.mubr.msk.bf16.mxu1 %vm307_vm2, %v724_v3  ;;  %v732_v11 = vld [vmem:[%s1012_s0] sm:$0xff]   ;;  %v734_v14 = vld [vmem:[%s1012_s0 + $0x8] sm:$0xff]   ;;  %v737_v16 = vld [vmem:[%s1011_s2 + $0x30] sm:$0xff]   ;;  %28 = vst [vmem:[%s1015_s6] sm:$0x1] %v744_v24 }
   0x5   :  { %678 = vmatprep.subr.bf16.mxu0 %v725_v5  ;;  %v733_v12 = vld [vmem:[%s1011_s2 + $0x20] sm:$0xff]   ;;  %686 = vmatprep.mubr.msk.bf16.mxu0 %vm124_vm3, %v732_v11  ;;  %v735_v15 = vld [vmem:[%s1011_s2 + $0x28] sm:$0xff]   ;;  %v736_v17 = vld [vmem:[%s1012_s0 + $0x10] sm:$0xff]   ;;  %29 = vst [vmem:[%s1016_s7] sm:$0x1] %v744_v24 }
   0x6   :  { %v731_v13 = vld [vmem:[%s1009_s1] sm:$0xff]   ;;  %v739_v18 = vld [vmem:[%s1011_s2 + $0x38] sm:$0xff]   ;;  %v741_v21 = vld [vmem:[%s1012_s0 + $0x28] sm:$0xff]  }
   0x7   :  { %705 = vmatmul.mubr.msk.bf16.vlgmr.msra.gmra.mxu1 %vm307_vm2, %v726_v6  ;;  %679 = vmatpush3.bf16.msra.mxu0 %v725_v5  ;;  %v738_v19 = vld [vmem:[%s1012_s0 + $0x18] sm:$0xff]   ;;  %v740_v20 = vld [vmem:[%s1012_s0 + $0x20] sm:$0xff]   ;;  %v742_v22 = vld [vmem:[%s1012_s0 + $0x30] sm:$0xff]  }
   0x8   :  { %708 = vmatprep.mubr.msk.bf16.mxu1 %vm307_vm2, %v728_v8  ;;  %680 = vmatprep.subr.bf16.mxu0 %v727_v7  ;;  %v743_v23 = vld [vmem:[%s1012_s0 + $0x38] sm:$0xff]  }
   0xb   :  { %681 = vmatpush3.bf16.msra.mxu0 %v727_v7 }
   0xc   :  { %682 = vmatprep.subr.bf16.mxu0 %v729_v9 }
   0xf   :  { %709 = vmatmul.mubr.msk.bf16.gmra.mxu1 %vm307_vm2, %v730_v10  ;;  %683 = vmatpush3.bf16.msra.mxu0 %v729_v9 }
  0x10   :  { %712 = vmatprep.mubr.msk.bf16.mxu1 %vm307_vm2, %v733_v12  ;;  %684 = vmatprep.subr.bf16.mxu0 %v731_v13 }
  0x13   :  { %685 = vmatpush3.bf16.msra.mxu0 %v731_v13 }
  0x16   :  { %687 = vmatmul.mubr.msk.bf16.vlgmr.msra.gmra.mxu0 %vm124_vm3, %v734_v14 }
  0x17   :  { %713 = vmatmul.mubr.msk.bf16.gmra.mxu1 %vm307_vm2, %v735_v15  ;;  %690 = vmatprep.mubr.msk.bf16.mxu0 %vm124_vm3, %v736_v17 }
  0x18   :  { %716 = vmatprep.mubr.msk.bf16.mxu1 %vm307_vm2, %v737_v16 }
  0x1e   :  { %691 = vmatmul.mubr.msk.bf16.gmra.mxu0 %vm124_vm3, %v738_v19 }
  0x1f   :  { %717 = vmatmul.mubr.msk.bf16.gmra.mxu1 %vm307_vm2, %v739_v18  ;;  %694 = vmatprep.mubr.msk.bf16.mxu0 %vm124_vm3, %v740_v20 }
  0x26   :  { %695 = vmatmul.mubr.msk.bf16.gmra.mxu0 %vm124_vm3, %v741_v21 }
  0x27   :  { %698 = vmatprep.mubr.msk.bf16.mxu0 %vm124_vm3, %v742_v22 }
  0x2e   :  { %699 = vmatmul.mubr.msk.bf16.gmra.mxu0 %vm124_vm3, %v743_v23 }
  0xc7   :  { %v706_v25 = vpop.f32.mrf.mxu1 }
  0xc8   :  { %451 = vst [vmem:[%s1017_s5 + $0x10] sm:$0xff] %v706_v25  ;;  %v556_v30 = vmul.f32 %v706_v25, %v706_v25 }
  0xc9   :  { %v370_v26 = vpop.f32.mrf.mxu1 }
  0xca   :  { %449 = vst [vmem:[%s1017_s5] sm:$0xff] %v370_v26  ;;  %v554_v28 = vmul.f32 %v370_v26, %v370_v26 }
  0xcb   :  { %v707_v27 = vpop.f32.mrf.mxu1 }
  0xcc   :  { %452 = vst [vmem:[%s1017_s5 + $0x18] sm:$0xff] %v707_v27  ;;  %v557_v34 = vmul.f32 %v707_v27, %v707_v27 }
  0xcd   :  { %v373_v29 = vpop.f32.mrf.mxu1 }
  0xce   :  { %450 = vst [vmem:[%s1017_s5 + $0x8] sm:$0xff] %v373_v29  ;;  %v530_v31 = vadd.f32 %v373_v29, %v370_v26  ;;  %v555_v32 = vmul.f32 %v373_v29, %v373_v29 }
  0xcf   :  { %v710_v33 = vpop.f32.mrf.mxu1 }
  0xd0   :  { %v531_v35 = vadd.f32 %v706_v25, %v530_v31  ;;  %v570_v36 = vadd.f32 %v555_v32, %v554_v28  ;;  %455 = vst [vmem:[%s1017_s5 + $0x30] sm:$0xff] %v710_v33  ;;  %v560_v45 = vmul.f32 %v710_v33, %v710_v33 }
  0xd1   :  { %v386_v37 = vpop.f32.mrf.mxu1 }
  0xd2   :  { %v571_v38 = vadd.f32 %v570_v36, %v556_v30  ;;  %453 = vst [vmem:[%s1017_s5 + $0x20] sm:$0xff] %v386_v37  ;;  %v532_v39 = vadd.f32 %v707_v27, %v531_v35  ;;  %v558_v40 = vmul.f32 %v386_v37, %v386_v37 }
  0xd3   :  { %v711_v41 = vpop.f32.mrf.mxu1 }
  0xd4   :  { %v533_v42 = vadd.f32 %v532_v39, %v386_v37  ;;  %v572_v43 = vadd.f32 %v571_v38, %v557_v34  ;;  %456 = vst [vmem:[%s1017_s5 + $0x38] sm:$0xff] %v711_v41  ;;  %v561_v50 = vmul.f32 %v711_v41, %v711_v41 }
  0xd5   :  { %v389_v44 = vpop.f32.mrf.mxu1 }
  0xd6   :  { %v573_v46 = vadd.f32 %v572_v43, %v558_v40  ;;  %454 = vst [vmem:[%s1017_s5 + $0x28] sm:$0xff] %v389_v44  ;;  %v534_v47 = vadd.f32 %v533_v42, %v389_v44  ;;  %v559_v48 = vmul.f32 %v389_v44, %v389_v44  ;;  %v688_v53 = vpop.f32.mrf.mxu0 }
  0xd7   :  { %v714_v49 = vpop.f32.mrf.mxu1  ;;  %435 = vst [vmem:[%s1018_s4 + $0x10] sm:$0xff] %v688_v53  ;;  %v492_v13 = vmul.f32 %v688_v53, %v688_v53 }
  0xd8   :  { %v535_v51 = vadd.f32 %v710_v33, %v534_v47  ;;  %v574_v52 = vadd.f32 %v573_v46, %v559_v48  ;;  %459 = vst [vmem:[%s1017_s5 + $0x50] sm:$0xff] %v714_v49  ;;  %v187_v56 = vpop.f32.mrf.mxu0  ;;  %v564_v0 = vmul.f32 %v714_v49, %v714_v49 }
  0xd9   :  { %v402_v54 = vpop.f32.mrf.mxu1  ;;  %433 = vst [vmem:[%s1018_s4] sm:$0xff] %v187_v56  ;;  %v490_v5 = vmul.f32 %v187_v56, %v187_v56 }
  0xda   :  { %v575_v55 = vadd.f32 %v574_v52, %v560_v45  ;;  %457 = vst [vmem:[%s1017_s5 + $0x40] sm:$0xff] %v402_v54  ;;  %v536_v57 = vadd.f32 %v711_v41, %v535_v51  ;;  %v562_v58 = vmul.f32 %v402_v54, %v402_v54  ;;  %v689_v62 = vpop.f32.mrf.mxu0 }
  0xdb   :  { %v715_v59 = vpop.f32.mrf.mxu1  ;;  %436 = vst [vmem:[%s1018_s4 + $0x18] sm:$0xff] %v689_v62  ;;  %v493_v21 = vmul.f32 %v689_v62, %v689_v62 }
  0xdc   :  { %v537_v60 = vadd.f32 %v536_v57, %v402_v54  ;;  %v576_v61 = vadd.f32 %v575_v55, %v561_v50  ;;  %460 = vst [vmem:[%s1017_s5 + $0x58] sm:$0xff] %v715_v59  ;;  %v190_v2 = vpop.f32.mrf.mxu0  ;;  %v565_v9 = vmul.f32 %v715_v59, %v715_v59 }
  0xdd   :  { %v405_v63 = vpop.f32.mrf.mxu1  ;;  %434 = vst [vmem:[%s1018_s4 + $0x8] sm:$0xff] %v190_v2  ;;  %v466_v6 = vadd.f32 %v190_v2, %v187_v56  ;;  %v491_v7 = vmul.f32 %v190_v2, %v190_v2 }
  0xde   :  { %v577_v1 = vadd.f32 %v576_v61, %v562_v58  ;;  %458 = vst [vmem:[%s1017_s5 + $0x48] sm:$0xff] %v405_v63  ;;  %v538_v3 = vadd.f32 %v537_v60, %v405_v63  ;;  %v563_v4 = vmul.f32 %v405_v63, %v405_v63  ;;  %v692_v12 = vpop.f32.mrf.mxu0 }
  0xdf   :  { %v718_v8 = vpop.f32.mrf.mxu1  ;;  %v467_v14 = vadd.f32 %v688_v53, %v466_v6  ;;  %v506_v15 = vadd.f32 %v491_v7, %v490_v5  ;;  %439 = vst [vmem:[%s1018_s4 + $0x30] sm:$0xff] %v692_v12  ;;  %v496_v44 = vmul.f32 %v692_v12, %v692_v12 }
  0xe0   :  { %v539_v10 = vadd.f32 %v714_v49, %v538_v3  ;;  %v578_v11 = vadd.f32 %v577_v1, %v563_v4  ;;  %463 = vst [vmem:[%s1017_s5 + $0x70] sm:$0xff] %v718_v8  ;;  %v203_v18 = vpop.f32.mrf.mxu0  ;;  %v568_v32 = vmul.f32 %v718_v8, %v718_v8 }
  0xe1   :  { %v418_v16 = vpop.f32.mrf.mxu1  ;;  %v507_v22 = vadd.f32 %v506_v15, %v492_v13  ;;  %437 = vst [vmem:[%s1018_s4 + $0x20] sm:$0xff] %v203_v18  ;;  %v468_v23 = vadd.f32 %v689_v62, %v467_v14  ;;  %v494_v29 = vmul.f32 %v203_v18, %v203_v18 }
  0xe2   :  { %v579_v17 = vadd.f32 %v578_v11, %v564_v0  ;;  %461 = vst [vmem:[%s1017_s5 + $0x60] sm:$0xff] %v418_v16  ;;  %v540_v19 = vadd.f32 %v715_v59, %v539_v10  ;;  %v566_v20 = vmul.f32 %v418_v16, %v418_v16  ;;  %v693_v27 = vpop.f32.mrf.mxu0 }
  0xe3   :  { %v719_v24 = vpop.f32.mrf.mxu1  ;;  %v469_v28 = vadd.f32 %v468_v23, %v203_v18  ;;  %v508_v30 = vadd.f32 %v507_v22, %v493_v21  ;;  %440 = vst [vmem:[%s1018_s4 + $0x38] sm:$0xff] %v693_v27  ;;  %v497_v50 = vmul.f32 %v693_v27, %v693_v27  ;;  %v553_v23 = vld [vmem:[%s1014_s9] sm:$0x1] }
  0xe4   :  { %v541_v25 = vadd.f32 %v540_v19, %v418_v16  ;;  %v580_v26 = vadd.f32 %v579_v17, %v565_v9  ;;  %464 = vst [vmem:[%s1017_s5 + $0x78] sm:$0xff] %v719_v24  ;;  %v206_v34 = vpop.f32.mrf.mxu0  ;;  %v569_v40 = vmul.f32 %v719_v24, %v719_v24  ;;  %v529_v16 = vld [vmem:[%s1013_s8] sm:$0x1] }
  0xe5   :  { %v421_v31 = vpop.f32.mrf.mxu1  ;;  %v509_v37 = vadd.f32 %v508_v30, %v494_v29  ;;  %438 = vst [vmem:[%s1018_s4 + $0x28] sm:$0xff] %v206_v34  ;;  %v470_v38 = vadd.f32 %v469_v28, %v206_v34  ;;  %v495_v39 = vmul.f32 %v206_v34, %v206_v34 }
  0xe6   :  { %v581_v33 = vadd.f32 %v580_v26, %v566_v20  ;;  %462 = vst [vmem:[%s1017_s5 + $0x68] sm:$0xff] %v421_v31  ;;  %v542_v35 = vadd.f32 %v541_v25, %v421_v31  ;;  %v567_v36 = vmul.f32 %v421_v31, %v421_v31  ;;  %v696_v43 = vpop.f32.mrf.mxu0 }
  0xe7   :  { %v471_v45 = vadd.f32 %v692_v12, %v470_v38  ;;  %v510_v46 = vadd.f32 %v509_v37, %v495_v39  ;;  %443 = vst [vmem:[%s1018_s4 + $0x50] sm:$0xff] %v696_v43  ;;  %v500_v4 = vmul.f32 %v696_v43, %v696_v43 }
  0xe8   :  { %v543_v41 = vadd.f32 %v718_v8, %v542_v35  ;;  %v582_v42 = vadd.f32 %v581_v33, %v567_v36  ;;  %v219_v49 = vpop.f32.mrf.mxu0 }
  0xe9   :  { %v511_v51 = vadd.f32 %v510_v46, %v496_v44  ;;  %441 = vst [vmem:[%s1018_s4 + $0x40] sm:$0xff] %v219_v49  ;;  %v472_v52 = vadd.f32 %v693_v27, %v471_v45  ;;  %v498_v57 = vmul.f32 %v219_v49, %v219_v49  ;;  %v465_v46 = vld [vmem:[%s1015_s6] sm:$0x1] }
  0xea   :  { %v544_v47 = vadd.f32 %v719_v24, %v543_v41  ;;  %v583_v48 = vadd.f32 %v582_v42, %v568_v32  ;;  %v697_v55 = vpop.f32.mrf.mxu0 }
  0xeb   :  { %v473_v56 = vadd.f32 %v472_v52, %v219_v49  ;;  %v512_v58 = vadd.f32 %v511_v51, %v497_v50  ;;  %444 = vst [vmem:[%s1018_s4 + $0x58] sm:$0xff] %v697_v55  ;;  %v501_v10 = vmul.f32 %v697_v55, %v697_v55  ;;  %v489_v49 = vld [vmem:[%s1016_s7] sm:$0x1] }
  0xec   :  { %v545_v53 = vrot.slane %v544_v47, 4  ;;  %v584_v54 = vadd.f32 %v583_v48, %v569_v40  ;;  %v222_v61 = vpop.f32.mrf.mxu0 }
  0xed   :  { %v513_v62 = vadd.f32 %v512_v58, %v498_v57  ;;  %442 = vst [vmem:[%s1018_s4 + $0x48] sm:$0xff] %v222_v61  ;;  %v474_v63 = vadd.f32 %v473_v56, %v222_v61  ;;  %v499_v0 = vmul.f32 %v222_v61, %v222_v61 }
  0xee   :  { %v546_v59 = vadd.f32 %v545_v53, %v544_v47  ;;  %v585_v60 = vrot.slane %v584_v54, 4  ;;  %v700_v3 = vpop.f32.mrf.mxu0 }
  0xef   :  { %v475_v5 = vadd.f32 %v696_v43, %v474_v63  ;;  %v514_v6 = vadd.f32 %v513_v62, %v499_v0  ;;  %447 = vst [vmem:[%s1018_s4 + $0x70] sm:$0xff] %v700_v3  ;;  %v504_v29 = vmul.f32 %v700_v3, %v700_v3 }
  0xf0   :  { %v547_v1 = vrot.slane %v546_v59, 2  ;;  %v586_v2 = vadd.f32 %v585_v60, %v584_v54  ;;  %v235_v9 = vpop.f32.mrf.mxu0 }
  0xf1   :  { %v515_v11 = vadd.f32 %v514_v6, %v500_v4  ;;  %445 = vst [vmem:[%s1018_s4 + $0x60] sm:$0xff] %v235_v9  ;;  %v476_v12 = vadd.f32 %v697_v55, %v475_v5  ;;  %v502_v18 = vmul.f32 %v235_v9, %v235_v9 }
  0xf2   :  { %v548_v7 = vadd.f32 %v547_v1, %v546_v59  ;;  %v587_v8 = vrot.slane %v586_v2, 2  ;;  %v701_v15 = vpop.f32.mrf.mxu0 }
  0xf3   :  { %v477_v17 = vadd.f32 %v476_v12, %v235_v9  ;;  %v516_v19 = vadd.f32 %v515_v11, %v501_v10  ;;  %448 = vst [vmem:[%s1018_s4 + $0x78] sm:$0xff] %v701_v15  ;;  %v505_v33 = vmul.f32 %v701_v15, %v701_v15 }
  0xf4   :  { %v549_v13 = vrot.slane %v548_v7, 1  ;;  %v588_v14 = vadd.f32 %v587_v8, %v586_v2  ;;  %v238_v22 = vpop.f32.mrf.mxu0 }
  0xf5   :  { %v517_v24 = vadd.f32 %v516_v19, %v502_v18  ;;  %446 = vst [vmem:[%s1018_s4 + $0x68] sm:$0xff] %v238_v22  ;;  %v478_v25 = vadd.f32 %v477_v17, %v238_v22  ;;  %v503_v26 = vmul.f32 %v238_v22, %v238_v22 }
  0xf6   :  { %v550_v20 = vadd.f32 %v549_v13, %v548_v7  ;;  %v589_v21 = vrot.slane %v588_v14, 1 }
  0xf7   :  { %v479_v30 = vadd.f32 %v700_v3, %v478_v25  ;;  %v518_v31 = vadd.f32 %v517_v24, %v503_v26 }
  0xf8   :  { %v551_v27 = vadd.f32 %v550_v20, %v529_v16  ;;  %v590_v28 = vadd.f32 %v589_v21, %v588_v14 }
  0xf9   :  { %v480_v34 = vadd.f32 %v701_v15, %v479_v30  ;;  %v519_v35 = vadd.f32 %v518_v31, %v504_v29 }
  0xfa   :  { %552 = vst [vmem:[%s1013_s8] sm:$0x1] %v551_v27  ;;  %v591_v32 = vadd.f32 %v590_v28, %v553_v23 }
  0xfb   :  { %v481_v36 = vrot.slane %v480_v34, 4  ;;  %v520_v37 = vadd.f32 %v519_v35, %v505_v33 }
  0xfc   :  { %592 = vst [vmem:[%s1014_s9] sm:$0x1] %v591_v32 }
  0xfd   :  { %v482_v38 = vadd.f32 %v481_v36, %v480_v34  ;;  %v521_v39 = vrot.slane %v520_v37, 4 }
  0xff   :  { %v483_v40 = vrot.slane %v482_v38, 2  ;;  %v522_v41 = vadd.f32 %v521_v39, %v520_v37 }
 0x101   :  { %v484_v42 = vadd.f32 %v483_v40, %v482_v38  ;;  %v523_v43 = vrot.slane %v522_v41, 2 }
 0x103   :  { %v485_v44 = vrot.slane %v484_v42, 1  ;;  %v524_v45 = vadd.f32 %v523_v43, %v522_v41 }
 0x105   :  { %v486_v47 = vadd.f32 %v485_v44, %v484_v42  ;;  %v525_v48 = vrot.slane %v524_v45, 1 }
 0x107   :  { %v487_v50 = vadd.f32 %v486_v47, %v465_v46  ;;  %v526_v51 = vadd.f32 %v525_v48, %v524_v45 }
 0x109   :  { %488 = vst [vmem:[%s1015_s6] sm:$0x1] %v487_v50  ;;  %v527_v52 = vadd.f32 %v526_v51, %v489_v49 }
 0x10b   :  { %528 = vst [vmem:[%s1016_s7] sm:$0x1] %v527_v52 }

</bundles_post_ra>
